<compile_context>
chip_gen: v7x
topology: tpu7x:2x2x1
jax: 0.10.0
libtpu: 0.0.40
codegen_flags: <defaults>
</compile_context>

<pallas_src>
import math
import functools

import jax
import jax.numpy as jnp
from jax.experimental import pallas as pl
from jax.experimental.pallas import tpu as pltpu


_VMEM_LIMIT = 32 * 1024 * 1024  # safe budget on v5e/v6e (128 MiB) and v7x (64 MiB/TC)


def _round_up(x, m):
    return ((x + m - 1) // m) * m


# ---------------------------------------------------------------------------
# Fused [LayerNorm] + linear (+ ReLU) (+ residual) over a (M, K) row slab.
# Requires K (= d_model) to fit in one block, which lets LN live in the prologue.
# ---------------------------------------------------------------------------
def _fused_linear_kernel(*refs, eps, apply_relu, has_residual, normalize):
    it = iter(refs)
    x_ref = next(it)
    w_ref = next(it)
    b_ref = next(it)
    ab_ref = next(it) if normalize else None
    res_ref = next(it) if has_residual else None
    o_ref = next(it)

    x = x_ref[...]
    if normalize:
        # LayerNorm fused into the matmul prologue.  Stats in f32; unbiased (N-1)
        # variance and eps added to std, matching torch.std() semantics exactly.
        xf = x.astype(jnp.float32)
        d = xf.shape[-1]
        mean = jnp.mean(xf, axis=-1, keepdims=True)
        c = xf - mean
        std = jnp.sqrt(jnp.sum(c * c, axis=-1, keepdims=True) / (d - 1))
        x = (ab_ref[0] * c / (std + eps) + ab_ref[1]).astype(x_ref.dtype)

    # Native-dtype operands straight to the MXU; accumulate in f32.
    out = jnp.dot(x, w_ref[...], preferred_element_type=jnp.float32)
    out = out + b_ref[...].astype(jnp.float32)
    if apply_relu:
        out = jnp.maximum(out, 0.0)
    if has_residual:
        out = out + res_ref[...].astype(jnp.float32)
    o_ref[...] = out.astype(o_ref.dtype)


def fused_linear(x2d, w, b, *, ln=None, relu=False, residual=None,
                 eps=1e-6, tm_pref=256):
    m, kdim = x2d.shape
    kw, n = w.shape
    assert kw == kdim

    # Row tiling with padding (handles ragged M instead of one giant block).
    tm = min(tm_pref, _round_up(m, 8))
    m_pad = _round_up(m, tm)
    if m_pad != m:
        x2d = jnp.pad(x2d, ((0, m_pad - m), (0, 0)))
        if residual is not None:
            residual = jnp.pad(residual, ((0, m_pad - m), (0, 0)))
    grid = (m_pad // tm,)

    in_specs = [
        pl.BlockSpec((tm, kdim), lambda i: (i, 0)),
        # Weight / bias block index is constant -> DMA'd once, VMEM-resident.
        pl.BlockSpec((kdim, n), lambda i: (0, 0)),
        pl.BlockSpec((1, n), lambda i: (0, 0)),
    ]
    args = [x2d, w, b.reshape(1, n)]
    if ln is not None:
        alpha, bias = ln
        ab = jnp.concatenate([jnp.reshape(alpha, (1,)),
                              jnp.reshape(bias, (1,))]).astype(jnp.float32)
        in_specs.append(pl.BlockSpec(memory_space=pltpu.MemorySpace.SMEM))
        args.append(ab)
    if residual is not None:
        in_specs.append(pl.BlockSpec((tm, n), lambda i: (i, 0)))
        args.append(residual)

    itemsize = x2d.dtype.itemsize
    bytes_accessed = itemsize * (m_pad * kdim + kdim * n + n + m_pad * n
                                 + (m_pad * n if residual is not None else 0))
    out = pl.pallas_call(
        functools.partial(_fused_linear_kernel, eps=eps, apply_relu=relu,
                          has_residual=residual is not None,
                          normalize=ln is not None),
        out_shape=jax.ShapeDtypeStruct((m_pad, n), x2d.dtype),
        grid_spec=pltpu.PrefetchScalarGridSpec(
            num_scalar_prefetch=0,
            grid=grid,
            in_specs=in_specs,
            out_specs=pl.BlockSpec((tm, n), lambda i: (i, 0)),
        ),
        compiler_params=pltpu.CompilerParams(
            dimension_semantics=("parallel",),
            vmem_limit_bytes=_VMEM_LIMIT),
        cost_estimate=pl.CostEstimate(
            flops=2 * m_pad * n * kdim + (10 * m_pad * kdim if ln is not None else 0),
            transcendentals=0,
            bytes_accessed=bytes_accessed),
    )(*args)
    return out[:m] if m_pad != m else out


# ---------------------------------------------------------------------------
# Fused FFN: LayerNorm + Linear(d->d_ff) + ReLU + Linear(d_ff->d) + residual.
# The (tm, d_ff) intermediate never touches HBM.
# ---------------------------------------------------------------------------
def _fused_ffn_kernel(x_ref, w1_ref, b1_ref, w2_ref, b2_ref, ab_ref, res_ref,
                      o_ref, *, eps):
    xf = x_ref[...].astype(jnp.float32)
    d = xf.shape[-1]
    mean = jnp.mean(xf, axis=-1, keepdims=True)
    c = xf - mean
    std = jnp.sqrt(jnp.sum(c * c, axis=-1, keepdims=True) / (d - 1))
    xn = (ab_ref[0] * c / (std + eps) + ab_ref[1]).astype(x_ref.dtype)

    hid = jnp.dot(xn, w1_ref[...], preferred_element_type=jnp.float32)
    hid = jnp.maximum(hid + b1_ref[...].astype(jnp.float32), 0.0)
    out = jnp.dot(hid.astype(w2_ref.dtype), w2_ref[...],
                  preferred_element_type=jnp.float32)
    out = out + b2_ref[...].astype(jnp.float32) + res_ref[...].astype(jnp.float32)
    o_ref[...] = out.astype(o_ref.dtype)


def fused_ffn(x2d, w1, b1, w2, b2, *, ln, residual, eps=1e-6, tm_pref=256):
    m, d = x2d.shape
    d_ff = w1.shape[1]
    tm = min(tm_pref, _round_up(m, 8))
    m_pad = _round_up(m, tm)
    if m_pad != m:
        x2d = jnp.pad(x2d, ((0, m_pad - m), (0, 0)))
        residual = jnp.pad(residual, ((0, m_pad - m), (0, 0)))
    grid = (m_pad // tm,)

    alpha, bias = ln
    ab = jnp.concatenate([jnp.reshape(alpha, (1,)),
                          jnp.reshape(bias, (1,))]).astype(jnp.float32)

    in_specs = [
        pl.BlockSpec((tm, d), lambda i: (i, 0)),
        pl.BlockSpec((d, d_ff), lambda i: (0, 0)),     # W1 resident
        pl.BlockSpec((1, d_ff), lambda i: (0, 0)),
        pl.BlockSpec((d_ff, d), lambda i: (0, 0)),     # W2 resident
        pl.BlockSpec((1, d), lambda i: (0, 0)),
        pl.BlockSpec(memory_space=pltpu.MemorySpace.SMEM),
        pl.BlockSpec((tm, d), lambda i: (i, 0)),
    ]
    args = [x2d, w1, b1.reshape(1, d_ff), w2, b2.reshape(1, d), ab, residual]

    itemsize = x2d.dtype.itemsize
    out = pl.pallas_call(
        functools.partial(_fused_ffn_kernel, eps=eps),
        out_shape=jax.ShapeDtypeStruct((m_pad, d), x2d.dtype),
        grid_spec=pltpu.PrefetchScalarGridSpec(
            num_scalar_prefetch=0,
            grid=grid,
            in_specs=in_specs,
            out_specs=pl.BlockSpec((tm, d), lambda i: (i, 0)),
        ),
        compiler_params=pltpu.CompilerParams(
            dimension_semantics=("parallel",),
            vmem_limit_bytes=_VMEM_LIMIT),
        cost_estimate=pl.CostEstimate(
            flops=4 * m_pad * d * d_ff + 10 * m_pad * d,
            transcendentals=0,
            bytes_accessed=itemsize * (3 * m_pad * d + 2 * d * d_ff + d + d_ff)),
    )(*args)
    return out[:m] if m_pad != m else out


# ---------------------------------------------------------------------------
# Multi-head "attention" exactly as in the spec: (Q K^T / sqrt(d_k)) [mask] @ V
# (the reference PyTorch code applies NO softmax -- we preserve that).
# Grid is (batch,); all heads of one batch element are processed per step by
# slicing the head lanes in-kernel (no host reshape/transpose of Q/K/V/O).
# ---------------------------------------------------------------------------
def _attention_kernel(*refs, scale, h, has_mask, mask_heads):
    if has_mask:
        q_ref, k_ref, v_ref, m_ref, o_ref = refs
    else:
        q_ref, k_ref, v_ref, o_ref = refs
    q = q_ref[0]                   # (sq, d_model)
    k = k_ref[0]                   # (sk, d_model)
    v = v_ref[0]                   # (sk, d_model)
    d_model = q.shape[-1]
    d_k = d_model // h
    if has_mask:
        mask = m_ref[...]          # (1, mask_heads, sq, sk)

    outs = []
    for hd in range(h):
        lo = hd * d_k
        qh = q[:, lo:lo + d_k]
        kh = k[:, lo:lo + d_k]
        vh = v[:, lo:lo + d_k]
        s = jax.lax.dot_general(
            qh, kh, (((1,), (1,)), ((), ())),
            preferred_element_type=jnp.float32) * scale        # (sq, sk)
        if has_mask:
            mh = mask[0, hd if mask_heads > 1 else 0]
            s = jnp.where(mh == 0, jnp.float32(-1e9), s)
        # NOTE: no softmax here -- faithful to the PyTorch module.
        outs.append(jnp.dot(s.astype(vh.dtype), vh,
                            preferred_element_type=jnp.float32))
    o_ref[0] = jnp.concatenate(outs, axis=-1).astype(o_ref.dtype)


def mha_attention(q, k, v, mask, h):
    b, sq, d_model = q.shape
    sk = k.shape[1]
    d_k = d_model // h
    scale = 1.0 / math.sqrt(d_k)

    in_specs = [
        pl.BlockSpec((1, sq, d_model), lambda i: (i, 0, 0)),
        pl.BlockSpec((1, sk, d_model), lambda i: (i, 0, 0)),
        pl.BlockSpec((1, sk, d_model), lambda i: (i, 0, 0)),
    ]
    args = [q, k, v]
    has_mask = mask is not None
    mask_heads = 1
    if has_mask:
        mask = jnp.asarray(mask)
        # Keep the mask compact: head dim stays 1 unless a per-head mask was given.
        tgt_shape = jnp.broadcast_shapes(mask.shape, (b, 1, sq, sk))
        mask4 = jnp.broadcast_to(mask, tgt_shape).astype(jnp.float32)
        mask_heads = tgt_shape[1]
        args.append(mask4)
        in_specs.append(pl.BlockSpec((1, mask_heads, sq, sk),
                                     lambda i: (i, 0, 0, 0)))

    itemsize = q.dtype.itemsize
    bytes_accessed = itemsize * b * (2 * sq * d_model + 2 * sk * d_model)
    if has_mask:
        bytes_accessed += 4 * b * mask_heads * sq * sk

    return pl.pallas_call(
        functools.partial(_attention_kernel, scale=scale, h=h,
                          has_mask=has_mask, mask_heads=mask_heads),
        out_shape=jax.ShapeDtypeStruct((b, sq, d_model), q.dtype),
        grid_spec=pltpu.PrefetchScalarGridSpec(
            num_scalar_prefetch=0,
            grid=(b,),
            in_specs=in_specs,
            out_specs=pl.BlockSpec((1, sq, d_model), lambda i: (i, 0, 0)),
        ),
        compiler_params=pltpu.CompilerParams(
            dimension_semantics=("parallel",),
            vmem_limit_bytes=_VMEM_LIMIT),
        cost_estimate=pl.CostEstimate(
            flops=4 * b * sq * sk * d_model,
            transcendentals=0,
            bytes_accessed=bytes_accessed),
    )(*args)


# ---------------------------------------------------------------------------
# DecoderBlock forward (pre-norm residual connections, dropout == identity).
# ---------------------------------------------------------------------------
def decoder_block(x, encoder_output, params, src_mask=None, tgt_mask=None, *, h):
    b, s_t, d = x.shape
    s_s = encoder_output.shape[1]
    assert d % h == 0
    p = params
    x2 = x.reshape(b * s_t, d)
    enc2 = encoder_output.reshape(b * s_s, d)

    # residual_connections[0]: self-attention on LayerNorm(x)
    w_qkv = jnp.concatenate([p["sa_wq"], p["sa_wk"], p["sa_wv"]], axis=1)
    b_qkv = jnp.concatenate([p["sa_bq"], p["sa_bk"], p["sa_bv"]])
    qkv = fused_linear(x2, w_qkv, b_qkv, ln=(p["ln0_alpha"], p["ln0_bias"]))
    q, kk, vv = qkv[:, :d], qkv[:, d:2 * d], qkv[:, 2 * d:]
    attn = mha_attention(q.reshape(b, s_t, d), kk.reshape(b, s_t, d),
                         vv.reshape(b, s_t, d), tgt_mask, h)
    x2 = fused_linear(attn.reshape(b * s_t, d), p["sa_wo"], p["sa_bo"], residual=x2)

    # residual_connections[1]: cross-attention with the encoder output
    q = fused_linear(x2, p["ca_wq"], p["ca_bq"], ln=(p["ln1_alpha"], p["ln1_bias"]))
    w_kv = jnp.concatenate([p["ca_wk"], p["ca_wv"]], axis=1)
    b_kv = jnp.concatenate([p["ca_bk"], p["ca_bv"]])
    kv = fused_linear(enc2, w_kv, b_kv)
    kk, vv = kv[:, :d], kv[:, d:]
    attn = mha_attention(q.reshape(b, s_t, d), kk.reshape(b, s_s, d),
                         vv.reshape(b, s_s, d), src_mask, h)
    x2 = fused_linear(attn.reshape(b * s_t, d), p["ca_wo"], p["ca_bo"], residual=x2)

    # residual_connections[2]: feed-forward block (fully fused)
    x2 = fused_ffn(x2, p["ff_w1"], p["ff_b1"], p["ff_w2"], p["ff_b2"],
                   ln=(p["ln2_alpha"], p["ln2_bias"]), residual=x2)

    # TODO(synk): training-mode dropout (p > 0) not implemented; this matches
    # eval-mode / p=0 semantics where nn.Dropout is the identity.
    return x2.reshape(b, s_t, d)


# ---------------------------------------------------------------------------
# Pure-JAX reference (mirrors the PyTorch module, including NO softmax).
# ---------------------------------------------------------------------------
def decoder_block_reference(x, enc_out, params, src_mask, tgt_mask, h, eps=1e-6):
    p = params

    def ln(t, alpha, bias):
        mean = jnp.mean(t, axis=-1, keepdims=True)
        c = t - mean
        var = jnp.sum(c * c, axis=-1, keepdims=True) / (t.shape[-1] - 1)
        return alpha * c / (jnp.sqrt(var) + eps) + bias

    def lin(t, w, bb):
        return jnp.matmul(t, w, precision="highest") + bb

    def attn(qq, kk, vv, mask):
        bsz, s_q, d_model = qq.shape
        s_k = kk.shape[1]
        d_k = d_model // h
        qh = qq.reshape(bsz, s_q, h, d_k).transpose(0, 2, 1, 3)
        kh = kk.reshape(bsz, s_k, h, d_k).transpose(0, 2, 1, 3)
        vh = vv.reshape(bsz, s_k, h, d_k).transpose(0, 2, 1, 3)
        s = jnp.einsum("bhqd,bhkd->bhqk", qh, kh,
                       precision="highest") / math.sqrt(d_k)
        if mask is not None:
            s = jnp.where(mask == 0, -1e9, s)
        o = jnp.einsum("bhqk,bhkd->bhqd", s, vh, precision="highest")
        return o.transpose(0, 2, 1, 3).reshape(bsz, s_q, d_model)

    xn = ln(x, p["ln0_alpha"], p["ln0_bias"])
    x = x + lin(attn(lin(xn, p["sa_wq"], p["sa_bq"]),
                     lin(xn, p["sa_wk"], p["sa_bk"]),
                     lin(xn, p["sa_wv"], p["sa_bv"]), tgt_mask),
                p["sa_wo"], p["sa_bo"])
    xn = ln(x, p["ln1_alpha"], p["ln1_bias"])
    x = x + lin(attn(lin(xn, p["ca_wq"], p["ca_bq"]),
                     lin(enc_out, p["ca_wk"], p["ca_bk"]),
                     lin(enc_out, p["ca_wv"], p["ca_bv"]), src_mask),
                p["ca_wo"], p["ca_bo"])
    xn = ln(x, p["ln2_alpha"], p["ln2_bias"])
    x = x + lin(jnp.maximum(lin(xn, p["ff_w1"], p["ff_b1"]), 0.0),
                p["ff_w2"], p["ff_b2"])
    return x


if __name__ == "__main__":
    batch, seq_tgt, seq_src = 2, 8, 8
    d_model, h, d_ff = 64, 4, 128

    key = jax.random.PRNGKey(0)
    ks = jax.random.split(key, 22)

    def w_init(k, shape, scale=0.1):
        return scale * jax.random.normal(k, shape, dtype=jnp.float32)

    params = {
        # LayerNorm scalar params (nn.Parameter scalars; non-trivial values).
        "ln0_alpha": jnp.asarray([1.10], jnp.float32), "ln0_bias": jnp.asarray([0.05], jnp.float32),
        "ln1_alpha": jnp.asarray([0.90], jnp.float32), "ln1_bias": jnp.asarray([-0.02], jnp.float32),
        "ln2_alpha": jnp.asarray([1.05], jnp.float32), "ln2_bias": jnp.asarray([0.01], jnp.float32),
        # self-attention projections (stored as (in, out) == W.T of nn.Linear).
        "sa_wq": w_init(ks[0], (d_model, d_model)), "sa_bq": w_init(ks[1], (d_model,)),
        "sa_wk": w_init(ks[2], (d_model, d_model)), "sa_bk": w_init(ks[3], (d_model,)),
        "sa_wv": w_init(ks[4], (d_model, d_model)), "sa_bv": w_init(ks[5], (d_model,)),
        "sa_wo": w_init(ks[6], (d_model, d_model)), "sa_bo": w_init(ks[7], (d_model,)),
        # cross-attention projections.
        "ca_wq": w_init(ks[8], (d_model, d_model)), "ca_bq": w_init(ks[9], (d_model,)),
        "ca_wk": w_init(ks[10], (d_model, d_model)), "ca_bk": w_init(ks[11], (d_model,)),
        "ca_wv": w_init(ks[12], (d_model, d_model)), "ca_bv": w_init(ks[13], (d_model,)),
        "ca_wo": w_init(ks[14], (d_model, d_model)), "ca_bo": w_init(ks[15], (d_model,)),
        # feed-forward block.
        "ff_w1": w_init(ks[16], (d_model, d_ff)), "ff_b1": w_init(ks[17], (d_ff,)),
        "ff_w2": w_init(ks[18], (d_ff, d_model)), "ff_b2": w_init(ks[19], (d_model,)),
    }

    x = jax.random.normal(ks[20], (batch, seq_tgt, d_model), dtype=jnp.float32)
    enc = jax.random.normal(ks[21], (batch, seq_src, d_model), dtype=jnp.float32)

    # Masks: causal target mask (shared across batch) and a source padding mask.
    tgt_mask = jnp.tril(jnp.ones((seq_tgt, seq_tgt), jnp.float32))[None, None]
    src_mask = jnp.ones((batch, 1, 1, seq_src), jnp.float32).at[1, :, :, -2:].set(0.0)

    run = jax.jit(functools.partial(decoder_block, h=h))

    for s_m, t_m in ((None, None), (src_mask, tgt_mask)):
        out = jax.block_until_ready(run(x, enc, params, s_m, t_m))
        ref = decoder_block_reference(x, enc, params, s_m, t_m, h)
        assert out.shape == (batch, seq_tgt, d_model)
        rel_err = float(jnp.max(jnp.abs(out - ref) / (1.0 + jnp.abs(ref))))
        assert rel_err < 2e-2, f"relative error too large: {rel_err}"

    print("KERNEL_OK")
</pallas_src>

<mosaic_0001>
module attributes {stable_mosaic.version = 11 : i64} {
  func.func @_fused_linear_kernel(%arg0: i32, %arg1: memref<16x64xf32, #tpu.memory_space<vmem>>, %arg2: memref<64x192xf32, #tpu.memory_space<vmem>>, %arg3: memref<1x192xf32, #tpu.memory_space<vmem>>, %arg4: memref<2xf32, #tpu.memory_space<smem>>, %arg5: memref<16x192xf32, #tpu.memory_space<vmem>>) attributes {dimension_semantics = [#tpu.dimension_semantics<parallel>], iteration_bounds = array<i64: 1>, scalar_prefetch = 0 : i64, scratch_operands = 0 : i64, tpu.core_type = #tpu.core_type<tc>, window_params = [{transform_indices = @transform_0, window_bounds = array<i64: 16, 64>}, {pipeline_mode = #tpu.pipeline_mode<synchronous>, transform_indices = @transform_1, window_bounds = array<i64: 64, 192>}, {pipeline_mode = #tpu.pipeline_mode<synchronous>, transform_indices = @transform_2, window_bounds = array<i64: 1, 192>}, {transform_indices = @transform_3, window_bounds = array<i64: 2>}, {transform_indices = @transform_4, window_bounds = array<i64: 16, 192>}]} {
    %c0 = arith.constant 0 : index
    %c0_0 = arith.constant 0 : index
    %0 = vector.load %arg1[%c0, %c0_0] : memref<16x64xf32, #tpu.memory_space<vmem>>, vector<16x64xf32>
    %cst = arith.constant dense<0.000000e+00> : vector<16xf32>
    %1 = vector.multi_reduction <add>, %0, %cst [1] : vector<16x64xf32> to vector<16xf32>
    %2 = vector.shape_cast %1 : vector<16xf32> to vector<16x1xf32>
    %cst_1 = arith.constant 6.400000e+01 : f32
    %3 = vector.broadcast %cst_1 : f32 to vector<16x1xf32>
    %4 = arith.divf %2, %3 : vector<16x1xf32>
    %5 = vector.broadcast %4 : vector<16x1xf32> to vector<16x64xf32>
    %6 = arith.subf %0, %5 : vector<16x64xf32>
    %7 = arith.mulf %6, %6 : vector<16x64xf32>
    %cst_2 = arith.constant dense<0.000000e+00> : vector<16xf32>
    %8 = vector.multi_reduction <add>, %7, %cst_2 [1] : vector<16x64xf32> to vector<16xf32>
    %9 = vector.shape_cast %8 : vector<16xf32> to vector<16x1xf32>
    %cst_3 = arith.constant 6.300000e+01 : f32
    %10 = vector.broadcast %cst_3 : f32 to vector<16x1xf32>
    %11 = arith.divf %9, %10 : vector<16x1xf32>
    %12 = math.sqrt %11 : vector<16x1xf32>
    %c0_4 = arith.constant 0 : index
    %13 = memref.load %arg4[%c0_4] : memref<2xf32, #tpu.memory_space<smem>>
    %14 = vector.broadcast %13 : f32 to vector<16x64xf32>
    %15 = arith.mulf %14, %6 : vector<16x64xf32>
    %cst_5 = arith.constant 9.99999997E-7 : f32
    %16 = vector.broadcast %cst_5 : f32 to vector<16x1xf32>
    %17 = arith.addf %12, %16 : vector<16x1xf32>
    %18 = vector.broadcast %17 : vector<16x1xf32> to vector<16x64xf32>
    %19 = arith.divf %15, %18 : vector<16x64xf32>
    %c1 = arith.constant 1 : index
    %20 = memref.load %arg4[%c1] : memref<2xf32, #tpu.memory_space<smem>>
    %21 = vector.broadcast %20 : f32 to vector<16x64xf32>
    %22 = arith.addf %19, %21 : vector<16x64xf32>
    %c0_6 = arith.constant 0 : index
    %c0_7 = arith.constant 0 : index
    %23 = vector.load %arg2[%c0_6, %c0_7] : memref<64x192xf32, #tpu.memory_space<vmem>>, vector<64x192xf32>
    %cst_8 = arith.constant dense<0.000000e+00> : vector<16x192xf32>
    %24 = tpu.matmul %22, %23, %cst_8 {dimension_numbers = #tpu.dot_dimension_numbers<[1], [0], [0], [1], [0, 0, 1, 1], [], []>} : vector<16x64xf32>, vector<64x192xf32>, vector<16x192xf32> -> vector<16x192xf32>
    %c0_9 = arith.constant 0 : index
    %c0_10 = arith.constant 0 : index
    %25 = vector.load %arg3[%c0_9, %c0_10] : memref<1x192xf32, #tpu.memory_space<vmem>>, vector<1x192xf32>
    %26 = vector.broadcast %25 : vector<1x192xf32> to vector<16x192xf32>
    %27 = arith.addf %24, %26 : vector<16x192xf32>
    %c0_11 = arith.constant 0 : index
    %c0_12 = arith.constant 0 : index
    %28 = vector.load %arg5[%c0_11, %c0_12] : memref<16x192xf32, #tpu.memory_space<vmem>>, vector<16x192xf32>
    tpu.vector_store %arg5[%c0_11, %c0_12], %27 {strides = array<i32>} : memref<16x192xf32, #tpu.memory_space<vmem>>, vector<16x192xf32>,
    return
  }
  func.func @transform_0(%arg0: i32) -> (i32, i32) {
    %c0_i32 = arith.constant 0 : i32
    %c0_i32_0 = arith.constant 0 : i32
    return %arg0, %c0_i32 : i32, i32
  }
  func.func @transform_1(%arg0: i32) -> (i32, i32) {
    %c0_i32 = arith.constant 0 : i32
    %c0_i32_0 = arith.constant 0 : i32
    %c0_i32_1 = arith.constant 0 : i32
    return %c0_i32, %c0_i32_0 : i32, i32
  }
  func.func @transform_2(%arg0: i32) -> (i32, i32) {
    %c0_i32 = arith.constant 0 : i32
    %c0_i32_0 = arith.constant 0 : i32
    %c0_i32_1 = arith.constant 0 : i32
    return %c0_i32, %c0_i32_0 : i32, i32
  }
  func.func @transform_3(%arg0: i32) -> i32 {
    %c0_i32 = arith.constant 0 : i32
    %c0_i32_0 = arith.constant 0 : i32
    return %c0_i32 : i32
  }
  func.func @transform_4(%arg0: i32) -> (i32, i32) {
    %c0_i32 = arith.constant 0 : i32
    %c0_i32_0 = arith.constant 0 : i32
    return %arg0, %c0_i32 : i32, i32
  }
}

module attributes {stable_mosaic.version = 11 : i64} {
  func.func @_fused_linear_kernel(%arg0: i32, %arg1: memref<16x64xf32, #tpu.memory_space<vmem>>, %arg2: memref<64x64xf32, #tpu.memory_space<vmem>>, %arg3: memref<1x64xf32, #tpu.memory_space<vmem>>, %arg4: memref<2xf32, #tpu.memory_space<smem>>, %arg5: memref<16x64xf32, #tpu.memory_space<vmem>>) attributes {dimension_semantics = [#tpu.dimension_semantics<parallel>], iteration_bounds = array<i64: 1>, scalar_prefetch = 0 : i64, scratch_operands = 0 : i64, tpu.core_type = #tpu.core_type<tc>, window_params = [{transform_indices = @transform_0, window_bounds = array<i64: 16, 64>}, {pipeline_mode = #tpu.pipeline_mode<synchronous>, transform_indices = @transform_1, window_bounds = array<i64: 64, 64>}, {pipeline_mode = #tpu.pipeline_mode<synchronous>, transform_indices = @transform_2, window_bounds = array<i64: 1, 64>}, {transform_indices = @transform_3, window_bounds = array<i64: 2>}, {transform_indices = @transform_4, window_bounds = array<i64: 16, 64>}]} {
    %c0 = arith.constant 0 : index
    %c0_0 = arith.constant 0 : index
    %0 = vector.load %arg1[%c0, %c0_0] : memref<16x64xf32, #tpu.memory_space<vmem>>, vector<16x64xf32>
    %cst = arith.constant dense<0.000000e+00> : vector<16xf32>
    %1 = vector.multi_reduction <add>, %0, %cst [1] : vector<16x64xf32> to vector<16xf32>
    %2 = vector.shape_cast %1 : vector<16xf32> to vector<16x1xf32>
    %cst_1 = arith.constant 6.400000e+01 : f32
    %3 = vector.broadcast %cst_1 : f32 to vector<16x1xf32>
    %4 = arith.divf %2, %3 : vector<16x1xf32>
    %5 = vector.broadcast %4 : vector<16x1xf32> to vector<16x64xf32>
    %6 = arith.subf %0, %5 : vector<16x64xf32>
    %7 = arith.mulf %6, %6 : vector<16x64xf32>
    %cst_2 = arith.constant dense<0.000000e+00> : vector<16xf32>
    %8 = vector.multi_reduction <add>, %7, %cst_2 [1] : vector<16x64xf32> to vector<16xf32>
    %9 = vector.shape_cast %8 : vector<16xf32> to vector<16x1xf32>
    %cst_3 = arith.constant 6.300000e+01 : f32
    %10 = vector.broadcast %cst_3 : f32 to vector<16x1xf32>
    %11 = arith.divf %9, %10 : vector<16x1xf32>
    %12 = math.sqrt %11 : vector<16x1xf32>
    %c0_4 = arith.constant 0 : index
    %13 = memref.load %arg4[%c0_4] : memref<2xf32, #tpu.memory_space<smem>>
    %14 = vector.broadcast %13 : f32 to vector<16x64xf32>
    %15 = arith.mulf %14, %6 : vector<16x64xf32>
    %cst_5 = arith.constant 9.99999997E-7 : f32
    %16 = vector.broadcast %cst_5 : f32 to vector<16x1xf32>
    %17 = arith.addf %12, %16 : vector<16x1xf32>
    %18 = vector.broadcast %17 : vector<16x1xf32> to vector<16x64xf32>
    %19 = arith.divf %15, %18 : vector<16x64xf32>
    %c1 = arith.constant 1 : index
    %20 = memref.load %arg4[%c1] : memref<2xf32, #tpu.memory_space<smem>>
    %21 = vector.broadcast %20 : f32 to vector<16x64xf32>
    %22 = arith.addf %19, %21 : vector<16x64xf32>
    %c0_6 = arith.constant 0 : index
    %c0_7 = arith.constant 0 : index
    %23 = vector.load %arg2[%c0_6, %c0_7] : memref<64x64xf32, #tpu.memory_space<vmem>>, vector<64x64xf32>
    %cst_8 = arith.constant dense<0.000000e+00> : vector<16x64xf32>
    %24 = tpu.matmul %22, %23, %cst_8 {dimension_numbers = #tpu.dot_dimension_numbers<[1], [0], [0], [1], [0, 0, 1, 1], [], []>} : vector<16x64xf32>, vector<64x64xf32>, vector<16x64xf32> -> vector<16x64xf32>
    %c0_9 = arith.constant 0 : index
    %c0_10 = arith.constant 0 : index
    %25 = vector.load %arg3[%c0_9, %c0_10] : memref<1x64xf32, #tpu.memory_space<vmem>>, vector<1x64xf32>
    %26 = vector.broadcast %25 : vector<1x64xf32> to vector<16x64xf32>
    %27 = arith.addf %24, %26 : vector<16x64xf32>
    %c0_11 = arith.constant 0 : index
    %c0_12 = arith.constant 0 : index
    %28 = vector.load %arg5[%c0_11, %c0_12] : memref<16x64xf32, #tpu.memory_space<vmem>>, vector<16x64xf32>
    tpu.vector_store %arg5[%c0_11, %c0_12], %27 {strides = array<i32>} : memref<16x64xf32, #tpu.memory_space<vmem>>, vector<16x64xf32>,
    return
  }
  func.func @transform_0(%arg0: i32) -> (i32, i32) {
    %c0_i32 = arith.constant 0 : i32
    %c0_i32_0 = arith.constant 0 : i32
    return %arg0, %c0_i32 : i32, i32
  }
  func.func @transform_1(%arg0: i32) -> (i32, i32) {
    %c0_i32 = arith.constant 0 : i32
    %c0_i32_0 = arith.constant 0 : i32
    %c0_i32_1 = arith.constant 0 : i32
    return %c0_i32, %c0_i32_0 : i32, i32
  }
  func.func @transform_2(%arg0: i32) -> (i32, i32) {
    %c0_i32 = arith.constant 0 : i32
    %c0_i32_0 = arith.constant 0 : i32
    %c0_i32_1 = arith.constant 0 : i32
    return %c0_i32, %c0_i32_0 : i32, i32
  }
  func.func @transform_3(%arg0: i32) -> i32 {
    %c0_i32 = arith.constant 0 : i32
    %c0_i32_0 = arith.constant 0 : i32
    return %c0_i32 : i32
  }
  func.func @transform_4(%arg0: i32) -> (i32, i32) {
    %c0_i32 = arith.constant 0 : i32
    %c0_i32_0 = arith.constant 0 : i32
    return %arg0, %c0_i32 : i32, i32
  }
}

module attributes {stable_mosaic.version = 11 : i64} {
  func.func @_fused_linear_kernel(%arg0: i32, %arg1: memref<16x64xf32, #tpu.memory_space<vmem>>, %arg2: memref<64x64xf32, #tpu.memory_space<vmem>>, %arg3: memref<1x64xf32, #tpu.memory_space<vmem>>, %arg4: memref<16x64xf32, #tpu.memory_space<vmem>>, %arg5: memref<16x64xf32, #tpu.memory_space<vmem>>) attributes {dimension_semantics = [#tpu.dimension_semantics<parallel>], iteration_bounds = array<i64: 1>, scalar_prefetch = 0 : i64, scratch_operands = 0 : i64, tpu.core_type = #tpu.core_type<tc>, window_params = [{transform_indices = @transform_0, window_bounds = array<i64: 16, 64>}, {pipeline_mode = #tpu.pipeline_mode<synchronous>, transform_indices = @transform_1, window_bounds = array<i64: 64, 64>}, {pipeline_mode = #tpu.pipeline_mode<synchronous>, transform_indices = @transform_2, window_bounds = array<i64: 1, 64>}, {transform_indices = @transform_3, window_bounds = array<i64: 16, 64>}, {transform_indices = @transform_4, window_bounds = array<i64: 16, 64>}]} {
    %c0 = arith.constant 0 : index
    %c0_0 = arith.constant 0 : index
    %0 = vector.load %arg1[%c0, %c0_0] : memref<16x64xf32, #tpu.memory_space<vmem>>, vector<16x64xf32>
    %c0_1 = arith.constant 0 : index
    %c0_2 = arith.constant 0 : index
    %1 = vector.load %arg2[%c0_1, %c0_2] : memref<64x64xf32, #tpu.memory_space<vmem>>, vector<64x64xf32>
    %cst = arith.constant dense<0.000000e+00> : vector<16x64xf32>
    %2 = tpu.matmul %0, %1, %cst {dimension_numbers = #tpu.dot_dimension_numbers<[1], [0], [0], [1], [0, 0, 1, 1], [], []>} : vector<16x64xf32>, vector<64x64xf32>, vector<16x64xf32> -> vector<16x64xf32>
    %c0_3 = arith.constant 0 : index
    %c0_4 = arith.constant 0 : index
    %3 = vector.load %arg3[%c0_3, %c0_4] : memref<1x64xf32, #tpu.memory_space<vmem>>, vector<1x64xf32>
    %4 = vector.broadcast %3 : vector<1x64xf32> to vector<16x64xf32>
    %5 = arith.addf %2, %4 : vector<16x64xf32>
    %c0_5 = arith.constant 0 : index
    %c0_6 = arith.constant 0 : index
    %6 = vector.load %arg4[%c0_5, %c0_6] : memref<16x64xf32, #tpu.memory_space<vmem>>, vector<16x64xf32>
    %7 = arith.addf %5, %6 : vector<16x64xf32>
    %c0_7 = arith.constant 0 : index
    %c0_8 = arith.constant 0 : index
    %8 = vector.load %arg5[%c0_7, %c0_8] : memref<16x64xf32, #tpu.memory_space<vmem>>, vector<16x64xf32>
    tpu.vector_store %arg5[%c0_7, %c0_8], %7 {strides = array<i32>} : memref<16x64xf32, #tpu.memory_space<vmem>>, vector<16x64xf32>,
    return
  }
  func.func @transform_0(%arg0: i32) -> (i32, i32) {
    %c0_i32 = arith.constant 0 : i32
    %c0_i32_0 = arith.constant 0 : i32
    return %arg0, %c0_i32 : i32, i32
  }
  func.func @transform_1(%arg0: i32) -> (i32, i32) {
    %c0_i32 = arith.constant 0 : i32
    %c0_i32_0 = arith.constant 0 : i32
    %c0_i32_1 = arith.constant 0 : i32
    return %c0_i32, %c0_i32_0 : i32, i32
  }
  func.func @transform_2(%arg0: i32) -> (i32, i32) {
    %c0_i32 = arith.constant 0 : i32
    %c0_i32_0 = arith.constant 0 : i32
    %c0_i32_1 = arith.constant 0 : i32
    return %c0_i32, %c0_i32_0 : i32, i32
  }
  func.func @transform_3(%arg0: i32) -> (i32, i32) {
    %c0_i32 = arith.constant 0 : i32
    %c0_i32_0 = arith.constant 0 : i32
    return %arg0, %c0_i32 : i32, i32
  }
  func.func @transform_4(%arg0: i32) -> (i32, i32) {
    %c0_i32 = arith.constant 0 : i32
    %c0_i32_0 = arith.constant 0 : i32
    return %arg0, %c0_i32 : i32, i32
  }
}

module attributes {stable_mosaic.version = 11 : i64} {
  func.func @_attention_kernel(%arg0: i32, %arg1: memref<1x8x64xf32, #tpu.memory_space<vmem>>, %arg2: memref<1x8x64xf32, #tpu.memory_space<vmem>>, %arg3: memref<1x8x64xf32, #tpu.memory_space<vmem>>, %arg4: memref<1x8x64xf32, #tpu.memory_space<vmem>>) attributes {dimension_semantics = [#tpu.dimension_semantics<parallel>], iteration_bounds = array<i64: 2>, scalar_prefetch = 0 : i64, scratch_operands = 0 : i64, tpu.core_type = #tpu.core_type<tc>, window_params = [{transform_indices = @transform_0, window_bounds = array<i64: 1, 8, 64>}, {transform_indices = @transform_1, window_bounds = array<i64: 1, 8, 64>}, {transform_indices = @transform_2, window_bounds = array<i64: 1, 8, 64>}, {transform_indices = @transform_3, window_bounds = array<i64: 1, 8, 64>}]} {
    %c0 = arith.constant 0 : index
    %c0_0 = arith.constant 0 : index
    %c0_1 = arith.constant 0 : index
    %0 = vector.load %arg1[%c0, %c0_0, %c0_1] : memref<1x8x64xf32, #tpu.memory_space<vmem>>, vector<1x8x64xf32>
    %1 = vector.shape_cast %0 : vector<1x8x64xf32> to vector<8x64xf32>
    %c0_2 = arith.constant 0 : index
    %c0_3 = arith.constant 0 : index
    %c0_4 = arith.constant 0 : index
    %2 = vector.load %arg2[%c0_2, %c0_3, %c0_4] : memref<1x8x64xf32, #tpu.memory_space<vmem>>, vector<1x8x64xf32>
    %3 = vector.shape_cast %2 : vector<1x8x64xf32> to vector<8x64xf32>
    %c0_5 = arith.constant 0 : index
    %c0_6 = arith.constant 0 : index
    %c0_7 = arith.constant 0 : index
    %4 = vector.load %arg3[%c0_5, %c0_6, %c0_7] : memref<1x8x64xf32, #tpu.memory_space<vmem>>, vector<1x8x64xf32>
    %5 = vector.shape_cast %4 : vector<1x8x64xf32> to vector<8x64xf32>
    %6 = vector.extract_strided_slice %1 {offsets = [0, 0], sizes = [8, 16], strides = [1, 1]} : vector<8x64xf32> to vector<8x16xf32>
    %7 = vector.extract_strided_slice %3 {offsets = [0, 0], sizes = [8, 16], strides = [1, 1]} : vector<8x64xf32> to vector<8x16xf32>
    %8 = vector.extract_strided_slice %5 {offsets = [0, 0], sizes = [8, 16], strides = [1, 1]} : vector<8x64xf32> to vector<8x16xf32>
    %cst = arith.constant dense<0.000000e+00> : vector<8x8xf32>
    %9 = tpu.matmul %6, %7, %cst {dimension_numbers = #tpu.dot_dimension_numbers<[1], [1], [0], [0], [0, 0, 1, 0], [], []>} : vector<8x16xf32>, vector<8x16xf32>, vector<8x8xf32> -> vector<8x8xf32>
    %cst_8 = arith.constant 2.500000e-01 : f32
    %10 = vector.broadcast %cst_8 : f32 to vector<8x8xf32>
    %11 = arith.mulf %9, %10 : vector<8x8xf32>
    %cst_9 = arith.constant dense<0.000000e+00> : vector<8x16xf32>
    %12 = tpu.matmul %11, %8, %cst_9 {dimension_numbers = #tpu.dot_dimension_numbers<[1], [0], [0], [1], [0, 0, 1, 1], [], []>} : vector<8x8xf32>, vector<8x16xf32>, vector<8x16xf32> -> vector<8x16xf32>
    %13 = vector.extract_strided_slice %1 {offsets = [0, 16], sizes = [8, 16], strides = [1, 1]} : vector<8x64xf32> to vector<8x16xf32>
    %14 = vector.extract_strided_slice %3 {offsets = [0, 16], sizes = [8, 16], strides = [1, 1]} : vector<8x64xf32> to vector<8x16xf32>
    %15 = vector.extract_strided_slice %5 {offsets = [0, 16], sizes = [8, 16], strides = [1, 1]} : vector<8x64xf32> to vector<8x16xf32>
    %cst_10 = arith.constant dense<0.000000e+00> : vector<8x8xf32>
    %16 = tpu.matmul %13, %14, %cst_10 {dimension_numbers = #tpu.dot_dimension_numbers<[1], [1], [0], [0], [0, 0, 1, 0], [], []>} : vector<8x16xf32>, vector<8x16xf32>, vector<8x8xf32> -> vector<8x8xf32>
    %cst_11 = arith.constant 2.500000e-01 : f32
    %17 = vector.broadcast %cst_11 : f32 to vector<8x8xf32>
    %18 = arith.mulf %16, %17 : vector<8x8xf32>
    %cst_12 = arith.constant dense<0.000000e+00> : vector<8x16xf32>
    %19 = tpu.matmul %18, %15, %cst_12 {dimension_numbers = #tpu.dot_dimension_numbers<[1], [0], [0], [1], [0, 0, 1, 1], [], []>} : vector<8x8xf32>, vector<8x16xf32>, vector<8x16xf32> -> vector<8x16xf32>
    %20 = vector.extract_strided_slice %1 {offsets = [0, 32], sizes = [8, 16], strides = [1, 1]} : vector<8x64xf32> to vector<8x16xf32>
    %21 = vector.extract_strided_slice %3 {offsets = [0, 32], sizes = [8, 16], strides = [1, 1]} : vector<8x64xf32> to vector<8x16xf32>
    %22 = vector.extract_strided_slice %5 {offsets = [0, 32], sizes = [8, 16], strides = [1, 1]} : vector<8x64xf32> to vector<8x16xf32>
    %cst_13 = arith.constant dense<0.000000e+00> : vector<8x8xf32>
    %23 = tpu.matmul %20, %21, %cst_13 {dimension_numbers = #tpu.dot_dimension_numbers<[1], [1], [0], [0], [0, 0, 1, 0], [], []>} : vector<8x16xf32>, vector<8x16xf32>, vector<8x8xf32> -> vector<8x8xf32>
    %cst_14 = arith.constant 2.500000e-01 : f32
    %24 = vector.broadcast %cst_14 : f32 to vector<8x8xf32>
    %25 = arith.mulf %23, %24 : vector<8x8xf32>
    %cst_15 = arith.constant dense<0.000000e+00> : vector<8x16xf32>
    %26 = tpu.matmul %25, %22, %cst_15 {dimension_numbers = #tpu.dot_dimension_numbers<[1], [0], [0], [1], [0, 0, 1, 1], [], []>} : vector<8x8xf32>, vector<8x16xf32>, vector<8x16xf32> -> vector<8x16xf32>
    %27 = vector.extract_strided_slice %1 {offsets = [0, 48], sizes = [8, 16], strides = [1, 1]} : vector<8x64xf32> to vector<8x16xf32>
    %28 = vector.extract_strided_slice %3 {offsets = [0, 48], sizes = [8, 16], strides = [1, 1]} : vector<8x64xf32> to vector<8x16xf32>
    %29 = vector.extract_strided_slice %5 {offsets = [0, 48], sizes = [8, 16], strides = [1, 1]} : vector<8x64xf32> to vector<8x16xf32>
    %cst_16 = arith.constant dense<0.000000e+00> : vector<8x8xf32>
    %30 = tpu.matmul %27, %28, %cst_16 {dimension_numbers = #tpu.dot_dimension_numbers<[1], [1], [0], [0], [0, 0, 1, 0], [], []>} : vector<8x16xf32>, vector<8x16xf32>, vector<8x8xf32> -> vector<8x8xf32>
    %cst_17 = arith.constant 2.500000e-01 : f32
    %31 = vector.broadcast %cst_17 : f32 to vector<8x8xf32>
    %32 = arith.mulf %30, %31 : vector<8x8xf32>
    %cst_18 = arith.constant dense<0.000000e+00> : vector<8x16xf32>
    %33 = tpu.matmul %32, %29, %cst_18 {dimension_numbers = #tpu.dot_dimension_numbers<[1], [0], [0], [1], [0, 0, 1, 1], [], []>} : vector<8x8xf32>, vector<8x16xf32>, vector<8x16xf32> -> vector<8x16xf32>
    %34 = tpu.concatenate %12, %19, %26, %33 in 1 : vector<8x16xf32>, vector<8x16xf32>, vector<8x16xf32>, vector<8x16xf32> -> vector<8x64xf32>
    %c0_19 = arith.constant 0 : index
    %c0_20 = arith.constant 0 : index
    %c0_21 = arith.constant 0 : index
    %35 = vector.load %arg4[%c0_19, %c0_20, %c0_21] : memref<1x8x64xf32, #tpu.memory_space<vmem>>, vector<1x8x64xf32>
    %36 = vector.shape_cast %35 : vector<1x8x64xf32> to vector<8x64xf32>
    %37 = vector.shape_cast %34 : vector<8x64xf32> to vector<1x8x64xf32>
    tpu.vector_store %arg4[%c0_19, %c0_20, %c0_21], %37 {strides = array<i32>} : memref<1x8x64xf32, #tpu.memory_space<vmem>>, vector<1x8x64xf32>,
    return
  }
  func.func @transform_0(%arg0: i32) -> (i32, i32, i32) {
    %c0_i32 = arith.constant 0 : i32
    %c0_i32_0 = arith.constant 0 : i32
    %c0_i32_1 = arith.constant 0 : i32
    return %arg0, %c0_i32, %c0_i32_0 : i32, i32, i32
  }
  func.func @transform_1(%arg0: i32) -> (i32, i32, i32) {
    %c0_i32 = arith.constant 0 : i32
    %c0_i32_0 = arith.constant 0 : i32
    %c0_i32_1 = arith.constant 0 : i32
    return %arg0, %c0_i32, %c0_i32_0 : i32, i32, i32
  }
  func.func @transform_2(%arg0: i32) -> (i32, i32, i32) {
    %c0_i32 = arith.constant 0 : i32
    %c0_i32_0 = arith.constant 0 : i32
    %c0_i32_1 = arith.constant 0 : i32
    return %arg0, %c0_i32, %c0_i32_0 : i32, i32, i32
  }
  func.func @transform_3(%arg0: i32) -> (i32, i32, i32) {
    %c0_i32 = arith.constant 0 : i32
    %c0_i32_0 = arith.constant 0 : i32
    %c0_i32_1 = arith.constant 0 : i32
    return %arg0, %c0_i32, %c0_i32_0 : i32, i32, i32
  }
}

module attributes {stable_mosaic.version = 11 : i64} {
  func.func @_fused_linear_kernel(%arg0: i32, %arg1: memref<16x64xf32, #tpu.memory_space<vmem>>, %arg2: memref<64x128xf32, #tpu.memory_space<vmem>>, %arg3: memref<1x128xf32, #tpu.memory_space<vmem>>, %arg4: memref<16x128xf32, #tpu.memory_space<vmem>>) attributes {dimension_semantics = [#tpu.dimension_semantics<parallel>], iteration_bounds = array<i64: 1>, scalar_prefetch = 0 : i64, scratch_operands = 0 : i64, tpu.core_type = #tpu.core_type<tc>, window_params = [{transform_indices = @transform_0, window_bounds = array<i64: 16, 64>}, {pipeline_mode = #tpu.pipeline_mode<synchronous>, transform_indices = @transform_1, window_bounds = array<i64: 64, 128>}, {pipeline_mode = #tpu.pipeline_mode<synchronous>, transform_indices = @transform_2, window_bounds = array<i64: 1, 128>}, {transform_indices = @transform_3, window_bounds = array<i64: 16, 128>}]} {
    %c0 = arith.constant 0 : index
    %c0_0 = arith.constant 0 : index
    %0 = vector.load %arg1[%c0, %c0_0] : memref<16x64xf32, #tpu.memory_space<vmem>>, vector<16x64xf32>
    %c0_1 = arith.constant 0 : index
    %c0_2 = arith.constant 0 : index
    %1 = vector.load %arg2[%c0_1, %c0_2] : memref<64x128xf32, #tpu.memory_space<vmem>>, vector<64x128xf32>
    %cst = arith.constant dense<0.000000e+00> : vector<16x128xf32>
    %2 = tpu.matmul %0, %1, %cst {dimension_numbers = #tpu.dot_dimension_numbers<[1], [0], [0], [1], [0, 0, 1, 1], [], []>} : vector<16x64xf32>, vector<64x128xf32>, vector<16x128xf32> -> vector<16x128xf32>
    %c0_3 = arith.constant 0 : index
    %c0_4 = arith.constant 0 : index
    %3 = vector.load %arg3[%c0_3, %c0_4] : memref<1x128xf32, #tpu.memory_space<vmem>>, vector<1x128xf32>
    %4 = vector.broadcast %3 : vector<1x128xf32> to vector<16x128xf32>
    %5 = arith.addf %2, %4 : vector<16x128xf32>
    %c0_5 = arith.constant 0 : index
    %c0_6 = arith.constant 0 : index
    %6 = vector.load %arg4[%c0_5, %c0_6] : memref<16x128xf32, #tpu.memory_space<vmem>>, vector<16x128xf32>
    tpu.vector_store %arg4[%c0_5, %c0_6], %5 {strides = array<i32>} : memref<16x128xf32, #tpu.memory_space<vmem>>, vector<16x128xf32>,
    return
  }
  func.func @transform_0(%arg0: i32) -> (i32, i32) {
    %c0_i32 = arith.constant 0 : i32
    %c0_i32_0 = arith.constant 0 : i32
    return %arg0, %c0_i32 : i32, i32
  }
  func.func @transform_1(%arg0: i32) -> (i32, i32) {
    %c0_i32 = arith.constant 0 : i32
    %c0_i32_0 = arith.constant 0 : i32
    %c0_i32_1 = arith.constant 0 : i32
    return %c0_i32, %c0_i32_0 : i32, i32
  }
  func.func @transform_2(%arg0: i32) -> (i32, i32) {
    %c0_i32 = arith.constant 0 : i32
    %c0_i32_0 = arith.constant 0 : i32
    %c0_i32_1 = arith.constant 0 : i32
    return %c0_i32, %c0_i32_0 : i32, i32
  }
  func.func @transform_3(%arg0: i32) -> (i32, i32) {
    %c0_i32 = arith.constant 0 : i32
    %c0_i32_0 = arith.constant 0 : i32
    return %arg0, %c0_i32 : i32, i32
  }
}

module attributes {stable_mosaic.version = 11 : i64} {
  func.func @_fused_ffn_kernel(%arg0: i32, %arg1: memref<16x64xf32, #tpu.memory_space<vmem>>, %arg2: memref<64x128xf32, #tpu.memory_space<vmem>>, %arg3: memref<1x128xf32, #tpu.memory_space<vmem>>, %arg4: memref<128x64xf32, #tpu.memory_space<vmem>>, %arg5: memref<1x64xf32, #tpu.memory_space<vmem>>, %arg6: memref<2xf32, #tpu.memory_space<smem>>, %arg7: memref<16x64xf32, #tpu.memory_space<vmem>>, %arg8: memref<16x64xf32, #tpu.memory_space<vmem>>) attributes {dimension_semantics = [#tpu.dimension_semantics<parallel>], iteration_bounds = array<i64: 1>, scalar_prefetch = 0 : i64, scratch_operands = 0 : i64, tpu.core_type = #tpu.core_type<tc>, window_params = [{transform_indices = @transform_0, window_bounds = array<i64: 16, 64>}, {pipeline_mode = #tpu.pipeline_mode<synchronous>, transform_indices = @transform_1, window_bounds = array<i64: 64, 128>}, {pipeline_mode = #tpu.pipeline_mode<synchronous>, transform_indices = @transform_2, window_bounds = array<i64: 1, 128>}, {pipeline_mode = #tpu.pipeline_mode<synchronous>, transform_indices = @transform_3, window_bounds = array<i64: 128, 64>}, {pipeline_mode = #tpu.pipeline_mode<synchronous>, transform_indices = @transform_4, window_bounds = array<i64: 1, 64>}, {transform_indices = @transform_5, window_bounds = array<i64: 2>}, {transform_indices = @transform_6, window_bounds = array<i64: 16, 64>}, {transform_indices = @transform_7, window_bounds = array<i64: 16, 64>}]} {
    %c0 = arith.constant 0 : index
    %c0_0 = arith.constant 0 : index
    %0 = vector.load %arg1[%c0, %c0_0] : memref<16x64xf32, #tpu.memory_space<vmem>>, vector<16x64xf32>
    %cst = arith.constant dense<0.000000e+00> : vector<16xf32>
    %1 = vector.multi_reduction <add>, %0, %cst [1] : vector<16x64xf32> to vector<16xf32>
    %2 = vector.shape_cast %1 : vector<16xf32> to vector<16x1xf32>
    %cst_1 = arith.constant 6.400000e+01 : f32
    %3 = vector.broadcast %cst_1 : f32 to vector<16x1xf32>
    %4 = arith.divf %2, %3 : vector<16x1xf32>
    %5 = vector.broadcast %4 : vector<16x1xf32> to vector<16x64xf32>
    %6 = arith.subf %0, %5 : vector<16x64xf32>
    %7 = arith.mulf %6, %6 : vector<16x64xf32>
    %cst_2 = arith.constant dense<0.000000e+00> : vector<16xf32>
    %8 = vector.multi_reduction <add>, %7, %cst_2 [1] : vector<16x64xf32> to vector<16xf32>
    %9 = vector.shape_cast %8 : vector<16xf32> to vector<16x1xf32>
    %cst_3 = arith.constant 6.300000e+01 : f32
    %10 = vector.broadcast %cst_3 : f32 to vector<16x1xf32>
    %11 = arith.divf %9, %10 : vector<16x1xf32>
    %12 = math.sqrt %11 : vector<16x1xf32>
    %c0_4 = arith.constant 0 : index
    %13 = memref.load %arg6[%c0_4] : memref<2xf32, #tpu.memory_space<smem>>
    %14 = vector.broadcast %13 : f32 to vector<16x64xf32>
    %15 = arith.mulf %14, %6 : vector<16x64xf32>
    %cst_5 = arith.constant 9.99999997E-7 : f32
    %16 = vector.broadcast %cst_5 : f32 to vector<16x1xf32>
    %17 = arith.addf %12, %16 : vector<16x1xf32>
    %18 = vector.broadcast %17 : vector<16x1xf32> to vector<16x64xf32>
    %19 = arith.divf %15, %18 : vector<16x64xf32>
    %c1 = arith.constant 1 : index
    %20 = memref.load %arg6[%c1] : memref<2xf32, #tpu.memory_space<smem>>
    %21 = vector.broadcast %20 : f32 to vector<16x64xf32>
    %22 = arith.addf %19, %21 : vector<16x64xf32>
    %c0_6 = arith.constant 0 : index
    %c0_7 = arith.constant 0 : index
    %23 = vector.load %arg2[%c0_6, %c0_7] : memref<64x128xf32, #tpu.memory_space<vmem>>, vector<64x128xf32>
    %cst_8 = arith.constant dense<0.000000e+00> : vector<16x128xf32>
    %24 = tpu.matmul %22, %23, %cst_8 {dimension_numbers = #tpu.dot_dimension_numbers<[1], [0], [0], [1], [0, 0, 1, 1], [], []>} : vector<16x64xf32>, vector<64x128xf32>, vector<16x128xf32> -> vector<16x128xf32>
    %c0_9 = arith.constant 0 : index
    %c0_10 = arith.constant 0 : index
    %25 = vector.load %arg3[%c0_9, %c0_10] : memref<1x128xf32, #tpu.memory_space<vmem>>, vector<1x128xf32>
    %26 = vector.broadcast %25 : vector<1x128xf32> to vector<16x128xf32>
    %27 = arith.addf %24, %26 : vector<16x128xf32>
    %cst_11 = arith.constant 0.000000e+00 : f32
    %28 = vector.broadcast %cst_11 : f32 to vector<16x128xf32>
    %29 = arith.maximumf %27, %28 : vector<16x128xf32>
    %c0_12 = arith.constant 0 : index
    %c0_13 = arith.constant 0 : index
    %30 = vector.load %arg4[%c0_12, %c0_13] : memref<128x64xf32, #tpu.memory_space<vmem>>, vector<128x64xf32>
    %cst_14 = arith.constant dense<0.000000e+00> : vector<16x64xf32>
    %31 = tpu.matmul %29, %30, %cst_14 {dimension_numbers = #tpu.dot_dimension_numbers<[1], [0], [0], [1], [0, 0, 1, 1], [], []>} : vector<16x128xf32>, vector<128x64xf32>, vector<16x64xf32> -> vector<16x64xf32>
    %c0_15 = arith.constant 0 : index
    %c0_16 = arith.constant 0 : index
    %32 = vector.load %arg5[%c0_15, %c0_16] : memref<1x64xf32, #tpu.memory_space<vmem>>, vector<1x64xf32>
    %33 = vector.broadcast %32 : vector<1x64xf32> to vector<16x64xf32>
    %34 = arith.addf %31, %33 : vector<16x64xf32>
    %c0_17 = arith.constant 0 : index
    %c0_18 = arith.constant 0 : index
    %35 = vector.load %arg7[%c0_17, %c0_18] : memref<16x64xf32, #tpu.memory_space<vmem>>, vector<16x64xf32>
    %36 = arith.addf %34, %35 : vector<16x64xf32>
    %c0_19 = arith.constant 0 : index
    %c0_20 = arith.constant 0 : index
    %37 = vector.load %arg8[%c0_19, %c0_20] : memref<16x64xf32, #tpu.memory_space<vmem>>, vector<16x64xf32>
    tpu.vector_store %arg8[%c0_19, %c0_20], %36 {strides = array<i32>} : memref<16x64xf32, #tpu.memory_space<vmem>>, vector<16x64xf32>,
    return
  }
  func.func @transform_0(%arg0: i32) -> (i32, i32) {
    %c0_i32 = arith.constant 0 : i32
    %c0_i32_0 = arith.constant 0 : i32
    return %arg0, %c0_i32 : i32, i32
  }
  func.func @transform_1(%arg0: i32) -> (i32, i32) {
    %c0_i32 = arith.constant 0 : i32
    %c0_i32_0 = arith.constant 0 : i32
    %c0_i32_1 = arith.constant 0 : i32
    return %c0_i32, %c0_i32_0 : i32, i32
  }
  func.func @transform_2(%arg0: i32) -> (i32, i32) {
    %c0_i32 = arith.constant 0 : i32
    %c0_i32_0 = arith.constant 0 : i32
    %c0_i32_1 = arith.constant 0 : i32
    return %c0_i32, %c0_i32_0 : i32, i32
  }
  func.func @transform_3(%arg0: i32) -> (i32, i32) {
    %c0_i32 = arith.constant 0 : i32
    %c0_i32_0 = arith.constant 0 : i32
    %c0_i32_1 = arith.constant 0 : i32
    return %c0_i32, %c0_i32_0 : i32, i32
  }
  func.func @transform_4(%arg0: i32) -> (i32, i32) {
    %c0_i32 = arith.constant 0 : i32
    %c0_i32_0 = arith.constant 0 : i32
    %c0_i32_1 = arith.constant 0 : i32
    return %c0_i32, %c0_i32_0 : i32, i32
  }
  func.func @transform_5(%arg0: i32) -> i32 {
    %c0_i32 = arith.constant 0 : i32
    %c0_i32_0 = arith.constant 0 : i32
    return %c0_i32 : i32
  }
  func.func @transform_6(%arg0: i32) -> (i32, i32) {
    %c0_i32 = arith.constant 0 : i32
    %c0_i32_0 = arith.constant 0 : i32
    return %arg0, %c0_i32 : i32, i32
  }
  func.func @transform_7(%arg0: i32) -> (i32, i32) {
    %c0_i32 = arith.constant 0 : i32
    %c0_i32_0 = arith.constant 0 : i32
    return %arg0, %c0_i32 : i32, i32
  }
}

</mosaic_0001>

<bundles_post_ra>
// kernel: decoder_block.11
= control target key start
LH: loop header
LB: loop body
LE: loop exit
PB: predicated region body
PF: predicated region fallthrough
CT: control target
= control target key end

     0   :  { %9 = vsyncpa [#allocation3], 0  ;;  %s334_s0 = inlined_call_operand.vmem [shape: f32[16,64], index: 0, kind: input, shape index: {}]   ;;  %s335_s1 = inlined_call_operand.vmem [shape: f32[64,64], index: 1, kind: input, shape index: {}]   ;;  %s336_s2 = inlined_call_operand.vmem [shape: f32[1,64], index: 2, kind: input, shape index: {}]   ;;  %s337_s3 = inlined_call_operand.vmem [shape: f32[2], index: 3, kind: input, shape index: {}]   ;;  %s338_s4 = inlined_call_operand.vmem [shape: f32[16,64], index: 4, kind: output, shape index: {}]  }
   0x1   :  { %s22_s17 = sshll.u32 %s337_s3, 4  ;;  %s23_s17 = int_to_ptr.vmem [resolvable:$true] %s22_s17 }
   0x2   :  { %s244_s18 = scalar_lea.vmem %s23_s17, 16  ;;  %p249_p1 = scmp.lt.s32.totalorder %s23_s17, %s23_s17 }
   0x3   :  { %p245_p0 = scmp.ne.s32.totalorder %s23_s17, %s244_s18  ;;  %p250_p2 = scmp.lt.s32.totalorder %s244_s18, %s244_s18 }
   0x5   :  { %p251_p3 = por %p250_p2, %p249_p1 }
   0x7   :  { %p252_p4 = pnand %p251_p3, %p245_p0 }
   0x9   :  { %255 = shalt.err (!%p252_p4)
}
   0xa   :  { %s258_s19 = smov [#allocation2]  }
   0xb   :  { %25 = dma.vmem_to_smem %s23_s17, 16, %s258_s19, [#allocation3]  }
   0xc   :  { %256 = dma.done.wait [#allocation3], 16  }
   0xd   :  { %257 = vsyncadd [#allocation3], 4294967280 }
   0xe   :  { %29 = sfence }
   0xf   :  { %v30_v0 = vld [vmem:[%s334_s0] sm:$0xff]  ;;  %vm32_vm0 = vcmask 523264   ;;  %v31_v1 = vld [vmem:[%s334_s0 + $0x8] sm:$0xff]  ;;  %v85_v16 = vld [vmem:[%s335_s1 + $0x10] sm:$0xff]  ;;  %s186_s12 = sld [smem:[#allocation2 + $0x1]] }
  0x10   :  { %v33_v2 = vsel %vm32_vm0, %v30_v0, 0.0  ;;  %v36_v3 = vsel %vm32_vm0, %v31_v1, 0.0  ;;  %v83_v14 = vld [vmem:[%s335_s1] sm:$0xff]  ;;  %v84_v15 = vld [vmem:[%s335_s1 + $0x8] sm:$0xff]  ;;  %v86_v18 = vld [vmem:[%s335_s1 + $0x18] sm:$0xff] }
  0x11   :  { %34 = vadd.xlane.f32.xlu0 %v33_v2  ;;  %v219_v17 = vpack.c.bf16 %v84_v15, %v83_v14  ;;  %v223_v19 = vpack.c.bf16 %v86_v18, %v85_v16  ;;  %v87_v20 = vld [vmem:[%s335_s1 + $0x20] sm:$0xff]  ;;  %v88_v21 = vld [vmem:[%s335_s1 + $0x28] sm:$0xff]  ;;  %v89_v23 = vld [vmem:[%s335_s1 + $0x30] sm:$0xff] }
  0x12   :  { %v227_v22 = vpack.c.bf16 %v88_v21, %v87_v20  ;;  %v90_v24 = vld [vmem:[%s335_s1 + $0x38] sm:$0xff]  ;;  %s69_s1 = sld [smem:[#allocation2]]  ;;  %v187_v52 = vld [vmem:[%s336_s2] ss:$0 sm:$0xff] }
  0x13   :  { %220 = vmatprep.subr.bf16.mxu0 %v219_v17  ;;  %v231_v25 = vpack.c.bf16 %v90_v24, %v89_v23 }
  0x14   :  { %222 = vmatpush3.bf16.msra.mxu0 %v219_v17 }
  0x15   :  { %37 = vadd.xlane.f32.xlu0 %v36_v3  ;;  %224 = vmatprep.subr.bf16.mxu0 %v223_v19  ;;  %v80_v45 = vstv %s186_s12 }
  0x18   :  { %226 = vmatpush3.bf16.msra.mxu0 %v223_v19  ;;  %v70_v42 = vstv %s69_s1 }
  0x19   :  { %228 = vmatprep.subr.bf16.mxu0 %v227_v22 }
  0x1c   :  { %230 = vmatpush3.bf16.msra.mxu0 %v227_v22 }
  0x1d   :  { %232 = vmatprep.subr.bf16.mxu0 %v231_v25 }
  0x20   :  { %234 = vmatpush3.bf16.msra.mxu0 %v231_v25 }
  0x9e   :  { %v35_v4 = vpop.xlane.xlu0 %34 }
  0x9f   :  { %v40_v5 = vmul.f32 0.015625, %v35_v4 }
  0xa1   :  { %v42_v6 = vsub.f32 %v30_v0, %v40_v5 }
  0xa2   :  { %v38_v7 = vpop.xlane.xlu0 %37 }
  0xa3   :  { %v41_v8 = vmul.f32 0.015625, %v38_v7  ;;  %v44_v9 = vmul.f32 %v42_v6, %v42_v6  ;;  %v71_v43 = vmul.f32 %v70_v42, %v42_v6 }
  0xa5   :  { %v43_v10 = vsub.f32 %v31_v1, %v41_v8  ;;  %v46_v11 = vsel %vm32_vm0, %v44_v9, 0.0 }
  0xa6   :  { %47 = vadd.xlane.f32.xlu1 %v46_v11 }
  0xa7   :  { %v45_v12 = vmul.f32 %v43_v10, %v43_v10  ;;  %v72_v47 = vmul.f32 %v70_v42, %v43_v10 }
  0xa9   :  { %v49_v13 = vsel %vm32_vm0, %v45_v12, 0.0 }
  0xaa   :  { %50 = vadd.xlane.f32.xlu1 %v49_v13 }
 0x133   :  { %v48_v26 = vpop.xlane.xlu1 %47 }
 0x134   :  { %v53_v27 = vmul.f32 0.015873017, %v48_v26 }
 0x136   :  { %236 = vrsqrt.f32 %v53_v27  ;;  %vm57_vm1 = vcmp.eq.f32.partialorder %v53_v27, inf  ;;  %v60_v32 = vand.u32 2147483648, %v53_v27  ;;  %vm59_vm2 = vcmp.eq.f32.partialorder %v53_v27, 0.0 }
 0x137   :  { %v51_v28 = vpop.xlane.xlu1 %50 }
 0x138   :  { %v54_v29 = vmul.f32 0.015873017, %v51_v28 }
 0x13a   :  { %238 = vrsqrt.f32 %v54_v29  ;;  %vm64_vm3 = vcmp.eq.f32.partialorder %v54_v29, inf  ;;  %v67_v38 = vand.u32 2147483648, %v54_v29  ;;  %vm66_vm4 = vcmp.eq.f32.partialorder %v54_v29, 0.0 }
 0x140   :  { %v237_v30 = vpop.eup %236 }
 0x141   :  { %v56_v31 = vmul.f32 %v237_v30, %v53_v27 }
 0x143   :  { %v58_v33 = vsel %vm57_vm1, %v53_v27, %v56_v31 }
 0x144   :  { %v239_v34 = vpop.eup %238  ;;  %v61_v35 = vsel %vm59_vm2, %v60_v32, %v58_v33 }
 0x145   :  { %v63_v36 = vmul.f32 %v239_v34, %v54_v29  ;;  %v73_v37 = vadd.f32 1e-06, %v61_v35 }
 0x147   :  { %v65_v39 = vsel %vm64_vm3, %v54_v29, %v63_v36  ;;  %240 = vrcp.f32 %v73_v37 }
 0x148   :  { %v68_v40 = vsel %vm66_vm4, %v67_v38, %v65_v39 }
 0x149   :  { %v74_v41 = vadd.f32 1e-06, %v68_v40 }
 0x14b   :  { %242 = vrcp.f32 %v74_v41 }
 0x151   :  { %v241_v44 = vpop.eup %240 }
 0x152   :  { %v76_v46 = vmul.f32 %v241_v44, %v71_v43 }
 0x154   :  { %v81_v48 = vadd.f32 %v80_v45, %v76_v46 }
 0x155   :  { %v243_v49 = vpop.eup %242 }
 0x156   :  { %v78_v50 = vmul.f32 %v243_v49, %v72_v47  ;;  %216 = vmatprep.mubr.msk.f32.mxu0 %vm32_vm0, %v81_v48 }
 0x158   :  { %v82_v51 = vadd.f32 %v80_v45, %v78_v50 }
 0x15a   :  { %217 = vmatmul.mubr.msk.f32.vlgmr.msra.gmra.mrb[0].mxu0 %vm32_vm0, %v82_v51 }
 0x22d   :  { %v218_v53 = vpop.f32.mrb[0].mxu0 }
 0x22e   :  { %v176_v54 = vadd.f32 %v218_v53, %v187_v52  ;;  %v170_v55 = vpop.f32.mrb[1].mxu0 }
 0x22f   :  { %v171_v56 = vadd.f32 %v187_v52, %v170_v55 }
 0x230   :  { %180 = vst.msk [vmem:[%s338_s4 + $0x8] sm:$0xff] %vm32_vm0, %v176_v54 }
 0x231   :  { %179 = vst.msk [vmem:[%s338_s4] sm:$0xff] %vm32_vm0, %v171_v56 }
 0x232   :  { %185 = vsyncpa [#allocation3], 1 }

// kernel: decoder_block.10
= control target key start
LH: loop header
LB: loop body
LE: loop exit
PB: predicated region body
PF: predicated region fallthrough
CT: control target
= control target key end

     0   :  { %vm34_vm0 = vcmask 523264   ;;  %s248_s1 = inlined_call_operand.vmem [shape: f32[64,64], index: 1, kind: input, shape index: {}]   ;;  %s249_s0 = inlined_call_operand.vmem [shape: f32[16,64], index: 0, kind: input, shape index: {}]   ;;  %s250_s2 = inlined_call_operand.vmem [shape: f32[1,64], index: 2, kind: input, shape index: {}]   ;;  %s251_s3 = inlined_call_operand.vmem [shape: f32[16,64], index: 3, kind: input, shape index: {}]   ;;  %s252_s4 = inlined_call_operand.vmem [shape: f32[16,64], index: 4, kind: output, shape index: {}]  }
   0x1   :  { %v19_v0 = vld [vmem:[%s248_s1] sm:$0xff]  ;;  %v20_v1 = vld [vmem:[%s248_s1 + $0x8] sm:$0xff]  ;;  %v21_v2 = vld [vmem:[%s248_s1 + $0x10] sm:$0xff] }
   0x2   :  { %v158_v3 = vpack.c.bf16 %v20_v1, %v19_v0  ;;  %v22_v4 = vld [vmem:[%s248_s1 + $0x18] sm:$0xff]  ;;  %v23_v6 = vld [vmem:[%s248_s1 + $0x20] sm:$0xff]  ;;  %v24_v7 = vld [vmem:[%s248_s1 + $0x28] sm:$0xff] }
   0x3   :  { %v162_v5 = vpack.c.bf16 %v22_v4, %v21_v2  ;;  %v17_v8 = vld [vmem:[%s249_s0] sm:$0xff]  ;;  %v166_v9 = vpack.c.bf16 %v24_v7, %v23_v6  ;;  %v25_v10 = vld [vmem:[%s248_s1 + $0x30] sm:$0xff]  ;;  %v26_v11 = vld [vmem:[%s248_s1 + $0x38] sm:$0xff] }
   0x4   :  { %159 = vmatprep.subr.bf16.mxu0 %v158_v3  ;;  %155 = vmatprep.mubr.msk.f32.mxu0 %vm34_vm0, %v17_v8  ;;  %v170_v12 = vpack.c.bf16 %v26_v11, %v25_v10  ;;  %v18_v13 = vld [vmem:[%s249_s0 + $0x8] sm:$0xff]  ;;  %v126_v14 = vld [vmem:[%s250_s2] ss:$0 sm:$0xff] }
   0x5   :  { %161 = vmatpush3.bf16.msra.mxu0 %v158_v3  ;;  %v117_v16 = vld [vmem:[%s251_s3 + $0x8] sm:$0xff]  ;;  %v116_v19 = vld [vmem:[%s251_s3] sm:$0xff] }
   0x6   :  { %163 = vmatprep.subr.bf16.mxu0 %v162_v5 }
   0x9   :  { %165 = vmatpush3.bf16.msra.mxu0 %v162_v5 }
   0xa   :  { %167 = vmatprep.subr.bf16.mxu0 %v166_v9 }
   0xd   :  { %169 = vmatpush3.bf16.msra.mxu0 %v166_v9 }
   0xe   :  { %171 = vmatprep.subr.bf16.mxu0 %v170_v12 }
  0x11   :  { %173 = vmatpush3.bf16.msra.mxu0 %v170_v12 }
  0x14   :  { %156 = vmatmul.mubr.msk.f32.vlgmr.msra.gmra.mrb[0].mxu0 %vm34_vm0, %v18_v13 }
  0xe7   :  { %v157_v15 = vpop.f32.mrb[0].mxu0 }
  0xe8   :  { %v113_v17 = vadd.f32 %v157_v15, %v126_v14  ;;  %v107_v18 = vpop.f32.mrb[1].mxu0 }
  0xe9   :  { %v108_v20 = vadd.f32 %v126_v14, %v107_v18 }
  0xea   :  { %v119_v21 = vadd.f32 %v117_v16, %v113_v17 }
  0xeb   :  { %v118_v22 = vadd.f32 %v116_v19, %v108_v20 }
  0xec   :  { %121 = vst.msk [vmem:[%s252_s4 + $0x8] sm:$0xff] %vm34_vm0, %v119_v21 }
  0xed   :  { %120 = vst.msk [vmem:[%s252_s4] sm:$0xff] %vm34_vm0, %v118_v22 }

// kernel: decoder_block.8
= control target key start
LH: loop header
LB: loop body
LE: loop exit
PB: predicated region body
PF: predicated region fallthrough
CT: control target
= control target key end

     0   :  { %9 = vsyncpa [#allocation3], 0  ;;  %s371_s0 = inlined_call_operand.vmem [shape: f32[16,64], index: 0, kind: input, shape index: {}]   ;;  %s372_s1 = inlined_call_operand.vmem [shape: f32[64,192], index: 1, kind: input, shape index: {}]   ;;  %s373_s2 = inlined_call_operand.vmem [shape: f32[1,192], index: 2, kind: input, shape index: {}]   ;;  %s374_s3 = inlined_call_operand.vmem [shape: f32[2], index: 3, kind: input, shape index: {}]   ;;  %s375_s4 = inlined_call_operand.vmem [shape: f32[16,192], index: 4, kind: output, shape index: {}]  }
   0x1   :  { %s22_s17 = sshll.u32 %s374_s3, 4  ;;  %s23_s17 = int_to_ptr.vmem [resolvable:$true] %s22_s17 }
   0x2   :  { %s240_s18 = scalar_lea.vmem %s23_s17, 16  ;;  %p245_p1 = scmp.lt.s32.totalorder %s23_s17, %s23_s17 }
   0x3   :  { %p241_p0 = scmp.ne.s32.totalorder %s23_s17, %s240_s18  ;;  %p246_p2 = scmp.lt.s32.totalorder %s240_s18, %s240_s18 }
   0x5   :  { %p247_p3 = por %p246_p2, %p245_p1 }
   0x7   :  { %p248_p4 = pnand %p247_p3, %p241_p0 }
   0x9   :  { %251 = shalt.err (!%p248_p4)
}
   0xa   :  { %s254_s19 = smov [#allocation2]  }
   0xb   :  { %25 = dma.vmem_to_smem %s23_s17, 16, %s254_s19, [#allocation3]  }
   0xc   :  { %252 = dma.done.wait [#allocation3], 16  }
   0xd   :  { %253 = vsyncadd [#allocation3], 4294967280 }
   0xe   :  { %29 = sfence }
   0xf   :  { %v30_v0 = vld [vmem:[%s371_s0] sm:$0xff]  ;;  %vm32_vm0 = vcmask 523264   ;;  %v31_v1 = vld [vmem:[%s371_s0 + $0x8] sm:$0xff]  ;;  %v86_v15 = vld [vmem:[%s372_s1 + $0x18] sm:$0xff]  ;;  %v255_v37 = vmov 0.0   ;;  %s203_s26 = sld [smem:[#allocation2 + $0x1]] }
  0x10   :  { %v33_v2 = vsel %vm32_vm0, %v30_v0, 0.0  ;;  %v36_v3 = vsel %vm32_vm0, %v31_v1, 0.0  ;;  %v84_v14 = vld [vmem:[%s372_s1 + $0x8] sm:$0xff]  ;;  %v83_v17 = vld [vmem:[%s372_s1] sm:$0xff]  ;;  %v85_v18 = vld [vmem:[%s372_s1 + $0x10] sm:$0xff]  ;;  %181 = vmatprep.mubr.f32.mxu0 %v255_v37  ;;  %187 = vmatprep.mubr.f32.mxu1 %v255_v37 }
  0x11   :  { %34 = vadd.xlane.f32.xlu0 %v33_v2  ;;  %v206_v16 = vpack.c.bf16 %v86_v15, %v84_v14  ;;  %v208_v19 = vpack.c.bf16 %v85_v18, %v83_v17  ;;  %v88_v20 = vld [vmem:[%s372_s1 + $0x28] sm:$0xff]  ;;  %v90_v21 = vld [vmem:[%s372_s1 + $0x38] sm:$0xff]  ;;  %v87_v23 = vld [vmem:[%s372_s1 + $0x20] sm:$0xff] }
  0x12   :  { %v210_v22 = vpack.c.bf16 %v90_v21, %v88_v20  ;;  %v89_v24 = vld [vmem:[%s372_s1 + $0x30] sm:$0xff]  ;;  %v92_v26 = vld [vmem:[%s372_s1 + $0x48] sm:$0xff]  ;;  %v94_v27 = vld [vmem:[%s372_s1 + $0x58] sm:$0xff] }
  0x13   :  { %207 = vmatprep.subr.bf16.mxu0 %v206_v16  ;;  %222 = vmatprep.subr.bf16.mxu1 %v206_v16  ;;  %v212_v25 = vpack.c.bf16 %v89_v24, %v87_v23  ;;  %v91_v28 = vld [vmem:[%s372_s1 + $0x40] sm:$0xff]  ;;  %v214_v29 = vpack.c.bf16 %v94_v27, %v92_v26  ;;  %v93_v30 = vld [vmem:[%s372_s1 + $0x50] sm:$0xff]  ;;  %v96_v31 = vld [vmem:[%s372_s1 + $0x68] sm:$0xff] }
  0x14   :  { %209 = vmatpush1.bf16.msra.mxu0 %v208_v19  ;;  %226 = vmatpush1.bf16.msra.mxu1 %v208_v19  ;;  %v98_v32 = vld [vmem:[%s372_s1 + $0x78] sm:$0xff]  ;;  %v216_v33 = vpack.c.bf16 %v93_v30, %v91_v28  ;;  %v95_v35 = vld [vmem:[%s372_s1 + $0x60] sm:$0xff]  ;;  %v97_v36 = vld [vmem:[%s372_s1 + $0x70] sm:$0xff]  ;;  %s69_s1 = sld [smem:[#allocation2]] }
  0x15   :  { %37 = vadd.xlane.f32.xlu0 %v36_v3  ;;  %211 = vmatprep.subr.bf16.mxu0 %v210_v22  ;;  %v218_v34 = vpack.c.bf16 %v98_v32, %v96_v31  ;;  %v220_v38 = vpack.c.bf16 %v97_v36, %v95_v35  ;;  %v80_v58 = vstv %s203_s26 }
  0x16   :  { %223 = vmatprep.subr.bf16.mxu1 %v210_v22 }
  0x18   :  { %213 = vmatpush1.bf16.msra.mxu0 %v212_v25  ;;  %227 = vmatpush1.bf16.msra.mxu1 %v212_v25 }
  0x19   :  { %215 = vmatprep.subr.bf16.mxu0 %v214_v29  ;;  %224 = vmatprep.subr.bf16.mxu1 %v214_v29 }
  0x1a   :  { %v70_v55 = vstv %s69_s1 }
  0x1c   :  { %217 = vmatpush1.bf16.msra.mxu0 %v216_v33  ;;  %228 = vmatpush1.bf16.msra.mxu1 %v216_v33 }
  0x1d   :  { %219 = vmatprep.subr.bf16.mxu0 %v218_v34  ;;  %225 = vmatprep.subr.bf16.mxu1 %v218_v34 }
  0x20   :  { %221 = vmatpush1.bf16.msra.mxu0 %v220_v38  ;;  %229 = vmatpush1.bf16.msra.mxu1 %v220_v38 }
  0x9e   :  { %v35_v4 = vpop.xlane.xlu0 %34 }
  0x9f   :  { %v40_v5 = vmul.f32 0.015625, %v35_v4  ;;  %v99_v4 = vld [vmem:[%s373_s2] sm:$0x3] }
  0xa1   :  { %v292_v6 = vsub.f32 %v30_v0, %v40_v5 }
  0xa2   :  { %v38_v7 = vpop.xlane.xlu0 %37 }
  0xa3   :  { %v41_v8 = vmul.f32 0.015625, %v38_v7  ;;  %v44_v9 = vmul.f32 %v292_v6, %v292_v6  ;;  %v71_v56 = vmul.f32 %v70_v55, %v292_v6 }
  0xa5   :  { %v296_v10 = vsub.f32 %v31_v1, %v41_v8  ;;  %v46_v11 = vsel %vm32_vm0, %v44_v9, 0.0  ;;  %v101_v1 = vlaneseq }
  0xa6   :  { %47 = vadd.xlane.f32.xlu1 %v46_v11 }
  0xa7   :  { %v45_v12 = vmul.f32 %v296_v10, %v296_v10  ;;  %v72_v60 = vmul.f32 %v70_v55, %v296_v10  ;;  %v102_v2 = vshrl.u32 %v101_v1, 7 }
  0xa9   :  { %v49_v13 = vsel %vm32_vm0, %v45_v12, 0.0  ;;  %v103_v3 = vsub.s32 0, %v102_v2  ;;  %v107_v5 = vsub.s32 1, %v102_v2 }
  0xaa   :  { %50 = vadd.xlane.f32.xlu1 %v49_v13 }
  0xab   :  { %v104_v6 = vrot.slane %v99_v4, %v103_v3  ;;  %v108_v7 = vrot.slane %v99_v4, %v107_v5 }
 0x133   :  { %v48_v39 = vpop.xlane.xlu1 %47 }
 0x134   :  { %v53_v40 = vmul.f32 0.015873017, %v48_v39 }
 0x136   :  { %232 = vrsqrt.f32 %v53_v40  ;;  %vm57_vm1 = vcmp.eq.f32.partialorder %v53_v40, inf  ;;  %v60_v45 = vand.u32 2147483648, %v53_v40  ;;  %vm59_vm2 = vcmp.eq.f32.partialorder %v53_v40, 0.0 }
 0x137   :  { %v51_v41 = vpop.xlane.xlu1 %50 }
 0x138   :  { %v54_v42 = vmul.f32 0.015873017, %v51_v41 }
 0x13a   :  { %234 = vrsqrt.f32 %v54_v42  ;;  %vm64_vm3 = vcmp.eq.f32.partialorder %v54_v42, inf  ;;  %v67_v51 = vand.u32 2147483648, %v54_v42  ;;  %vm66_vm4 = vcmp.eq.f32.partialorder %v54_v42, 0.0 }
 0x140   :  { %v233_v43 = vpop.eup %232 }
 0x141   :  { %v56_v44 = vmul.f32 %v233_v43, %v53_v40 }
 0x143   :  { %v58_v46 = vsel %vm57_vm1, %v53_v40, %v56_v44 }
 0x144   :  { %v235_v47 = vpop.eup %234  ;;  %v61_v48 = vsel %vm59_vm2, %v60_v45, %v58_v46 }
 0x145   :  { %v63_v49 = vmul.f32 %v235_v47, %v54_v42  ;;  %v73_v50 = vadd.f32 1e-06, %v61_v48 }
 0x147   :  { %v65_v52 = vsel %vm64_vm3, %v54_v42, %v63_v49  ;;  %236 = vrcp.f32 %v73_v50 }
 0x148   :  { %v68_v53 = vsel %vm66_vm4, %v67_v51, %v65_v52 }
 0x149   :  { %v74_v54 = vadd.f32 1e-06, %v68_v53 }
 0x14b   :  { %238 = vrcp.f32 %v74_v54 }
 0x151   :  { %v237_v57 = vpop.eup %236 }
 0x152   :  { %v76_v59 = vmul.f32 %v237_v57, %v71_v56 }
 0x154   :  { %v81_v61 = vadd.f32 %v80_v58, %v76_v59 }
 0x155   :  { %v239_v62 = vpop.eup %238 }
 0x156   :  { %204 = vmatmul.mubr.msk.f32.vlgmr.msra.gmra.mrb[0].mxu0 %vm32_vm0, %v81_v61  ;;  %v78_v63 = vmul.f32 %v239_v62, %v72_v60 }
 0x158   :  { %v82_v0 = vadd.f32 %v80_v58, %v78_v63 }
 0x15a   :  { %205 = vmatmul.mubr.msk.f32.vlgmr.msra.gmra.mrb[0].mxu1 %vm32_vm0, %v82_v0 }
 0x229   :  { %v183_v8 = vpop.f32.mrb[0].mxu0 }
 0x22a   :  { %v184_v9 = vadd.f32 %v183_v8, %v104_v6  ;;  %v185_v10 = vpop.f32.mrb[1].mxu0 }
 0x22b   :  { %v186_v11 = vadd.f32 %v185_v10, %v108_v7 }
 0x22c   :  { %194 = vst [vmem:[%s375_s4] sm:$0xff] %v184_v9 }
 0x22d   :  { %195 = vst.msk [vmem:[%s375_s4 + $0x8] sm:$0xff] %vm32_vm0, %v186_v11  ;;  %v189_v12 = vpop.f32.mrb[0].mxu1 }
 0x22e   :  { %v190_v13 = vadd.f32 %v189_v12, %v104_v6  ;;  %v191_v14 = vpop.f32.mrb[1].mxu1 }
 0x22f   :  { %v192_v15 = vadd.f32 %v191_v14, %v108_v7 }
 0x230   :  { %196 = vst [vmem:[%s375_s4 + $0x10] sm:$0xff] %v190_v13 }
 0x231   :  { %197 = vst.msk [vmem:[%s375_s4 + $0x18] sm:$0xff] %vm32_vm0, %v192_v15 }
 0x232   :  { %202 = vsyncpa [#allocation3], 1 }

// kernel: decoder_block.9
= control target key start
LH: loop header
LB: loop body
LE: loop exit
PB: predicated region body
PF: predicated region fallthrough
CT: control target
= control target key end

     0   :  { %s1048_s12 = smov 0   ;;  %s1114_s0 = inlined_call_operand.vmem [shape: f32[2,8,64], index: 0, kind: input, shape index: {}]   ;;  %s1115_s1 = inlined_call_operand.vmem [shape: f32[2,8,64], index: 1, kind: input, shape index: {}]   ;;  %s1116_s2 = inlined_call_operand.vmem [shape: f32[2,8,64], index: 2, kind: input, shape index: {}]   ;;  %s1117_s3 = inlined_call_operand.vmem [shape: f32[2,8,64], index: 3, kind: output, shape index: {}]  }
   0x1 LB: > { %s917_s13 = sadd.s32 4294967295, %s1018_s12   ;;  %p921_p0 = scmp.ge.s32.totalorder %s1018_s12, 1  ;;  %s1018_s12 = sphi %s1048_s12, %s13_s12  }
   0x2   : > { %p154_p1 = scmp.lt.s32.totalorder %s1018_s12, 3 }
   0x4   : > { %p155_p2 = pnand %p921_p0, %p154_p1 }
   0x5   : > { %p184_p3 = scmp.lt.s32.totalorder (!%p155_p2), %s917_s13, 1  ;;  %v1020_v0 = vmov (!%p155_p2), 0.0   ;;  %vm1021_vm0 = vmmov (!%p155_p2), 0   ;;  %vm203_vm1 = vcmask (!%p155_p2), 130048   ;;  %s1022_s24 = smov (!%p155_p2), 112   ;;  %vm281_vm2 = vcmask (!%p155_p2), 64512  }
   0x6   : > { %158 = sbr.rel (%p155_p2) target bundleno = 789 (0x315), region = 32  ;;  %956 = vmatprep.subr.mxu0 (!%p155_p2), %v1020_v0  ;;  %958 = vmatprep.mubr.msk.f32.mxu0 (!%p155_p2), %vm1021_vm0, %v1020_v0  ;;  %s1023_s25 = smov (!%p155_p2), 96   ;;  %vm834_vm3 = vcmask (!%p155_p2), 261120   ;;  %vm836_vm4 = vcmask (!%p155_p2), 392192   ;;  %vm838_vm5 = vcmask (!%p155_p2), 523264  }
   0x7   : > { %961 = vmatprep.subr.mxu1 (!%p155_p2), %v1020_v0  ;;  %963 = vmatprep.mubr.msk.f32.mxu1 (!%p155_p2), %vm1021_vm0, %v1020_v0  ;;  %s1024_s26 = smov (!%p155_p2), 80   ;;  %s1025_s27 = smov (!%p155_p2), 16  }
   0x8   : > { %s1026_s28 = smov (!%p155_p2), 32   ;;  %s1027_s29 = smov (!%p155_p2), 48  }
   0xd   : > { %s1119_s13 = smov (!%p184_p3, %s917_s13), 1 }
   0xe   : > { %s1062_s14 = sshll.u32 %s1119_s13, 3 }
   0xf   : > { %s191_s17 = scalar_lea.vmem %s1115_s1, %s1062_s14  ;;  %s187_s20 = scalar_lea.vmem %s1114_s0, %s1062_s14 }
  0x10   : > { %v201_v1 = vld [vmem:[%s191_s17] sm:$0xff]  ;;  %s195_s23 = scalar_lea.vmem %s1116_s2, %s1062_s14  ;;  %s199_s5 = scalar_lea.vmem %s1117_s3, %s1062_s14 }
  0x11   : > { %957 = vmatpush3.xpose.msk.msra.mxu0 %vm203_vm1, %v201_v1  ;;  %v200_v2 = vld [vmem:[%s187_s20] sm:$0xff]  ;;  %357 = vrot.lane.b32.xlu0 %v201_v1, %s1022_s24 }
  0x12   : > { %v202_v3 = vld [vmem:[%s195_s23] sm:$0xff]  ;;  %513 = vrot.lane.b32.xlu1 %v201_v1, %s1023_s25  ;;  %971 = vmatprep.subr.mxu0 %v1020_v0 }
  0x13   : > { %962 = vmatpush3.msra.mxu1 %v202_v3 }
  0x14   : > { %966 = vmatprep.subr.mxu1 %v1020_v0  ;;  %959 = vmatmul.mubr.msk.f32.vlgmr.msra.gmra.mrb[0].mxu0 %vm203_vm1, %v200_v2 }
  0x15   : > { %355 = vrot.lane.b32.xlu0 %v200_v2, %s1022_s24  ;;  %973 = vmatprep.mubr.msk.f32.mxu0 %vm1021_vm0, %v1020_v0 }
  0x16   : > { %511 = vrot.lane.b32.xlu1 %v200_v2, %s1023_s25 }
  0x19   : > { %668 = vrot.lane.b32.xlu0 %v201_v1, %s1024_s26 }
  0x1a   : > { %666 = vrot.lane.b32.xlu1 %v200_v2, %s1024_s26 }
  0x1d   : > { %435 = vrot.lane.b32.xlu0 %v202_v3, %s1022_s24 }
  0x1e   : > { %590 = vrot.lane.b32.xlu1 %v202_v3, %s1023_s25 }
  0x21   : > { %745 = vrot.lane.b32.xlu0 %v202_v3, %s1024_s26 }
  0x83   : > { %v358_v4 = vpop.permute.xlu0 %357 }
  0x84   : > { %v514_v6 = vpop.permute.xlu1 %513 }
  0x87   : > { %v356_v9 = vpop.permute.xlu0 %355 }
  0x88   : > { %v512_v10 = vpop.permute.xlu1 %511 }
  0x8b   : > { %v669_v11 = vpop.permute.xlu0 %668 }
  0x8c   : > { %v667_v12 = vpop.permute.xlu1 %666 }
  0x8f   : > { %v436_v13 = vpop.permute.xlu0 %435 }
  0x90   : > { %972 = vmatpush3.msra.mxu0 %v436_v13  ;;  %v591_v19 = vpop.permute.xlu1 %590 }
  0x91   : > { %981 = vmatprep.subr.mxu0 %v1020_v0 }
  0x93   : > { %v746_v23 = vpop.permute.xlu0 %745 }
  0xe7   : > { %v276_v5 = vpop.f32.mrb[0].mxu0 }
  0xe8   : > { %v280_v7 = vmul.f32 0.25, %v276_v5  ;;  %v960_v8 = vpop.f32.mrb[1].mxu0 }
  0xea   : > { %964 = vmatmul.mubr.msk.f32.vlgmr.msra.gmra.mrb[0].mxu1 %vm281_vm2, %v280_v7 }
  0xeb   : > { %967 = vmatpush3.xpose.msk.msra.mxu1 %vm203_vm1, %v358_v4  ;;  %968 = vmatprep.mubr.msk.f32.mxu1 %vm1021_vm0, %v1020_v0 }
  0xec   : > { %976 = vmatprep.subr.mxu1 %v1020_v0 }
  0xee   : > { %969 = vmatmul.mubr.msk.f32.vlgmr.msra.gmra.mrb[2].mxu1 %vm203_vm1, %v356_v9 }
  0xef   : > { %977 = vmatpush3.xpose.msk.msra.mxu1 %vm203_vm1, %v514_v6  ;;  %978 = vmatprep.mubr.msk.f32.mxu1 %vm1021_vm0, %v1020_v0 }
  0xf0   : > { %986 = vmatprep.subr.mxu1 %v1020_v0 }
  0xf2   : > { %979 = vmatmul.mubr.msk.f32.vlgmr.msra.gmra.mrb[4].mxu1 %vm203_vm1, %v512_v10 }
  0xf3   : > { %987 = vmatpush3.xpose.msk.msra.mxu1 %vm203_vm1, %v669_v11  ;;  %988 = vmatprep.mubr.msk.f32.mxu1 %vm1021_vm0, %v1020_v0 }
  0xf6   : > { %989 = vmatmul.mubr.msk.f32.vlgmr.msra.gmra.mrb[6].mxu1 %vm203_vm1, %v667_v12 }
 0x1bd   : > { %v351_v14 = vpop.f32.mrb[0].mxu1 }
 0x1be   : > { %v965_v15 = vpop.f32.mrb[1].mxu1 }
 0x1c1   : > { %v429_v16 = vpop.f32.mrb[2].mxu1 }
 0x1c2   : > { %v433_v17 = vmul.f32 0.25, %v429_v16  ;;  %v970_v18 = vpop.f32.mrb[3].mxu1 }
 0x1c4   : > { %974 = vmatmul.mubr.msk.f32.vlgmr.msra.gmra.mrb[2].mxu0 %vm281_vm2, %v433_v17 }
 0x1c5   : > { %982 = vmatpush3.msra.mxu0 %v591_v19  ;;  %v585_v20 = vpop.f32.mrb[4].mxu1  ;;  %983 = vmatprep.mubr.msk.f32.mxu0 %vm1021_vm0, %v1020_v0 }
 0x1c6   : > { %v589_v21 = vmul.f32 0.25, %v585_v20  ;;  %v980_v22 = vpop.f32.mrb[5].mxu1  ;;  %991 = vmatprep.subr.mxu0 %v1020_v0 }
 0x1c8   : > { %984 = vmatmul.mubr.msk.f32.vlgmr.msra.gmra.mrb[4].mxu0 %vm281_vm2, %v589_v21 }
 0x1c9   : > { %992 = vmatpush3.msra.mxu0 %v746_v23  ;;  %v740_v24 = vpop.f32.mrb[6].mxu1  ;;  %993 = vmatprep.mubr.msk.f32.mxu0 %vm1021_vm0, %v1020_v0 }
 0x1ca   : > { %v744_v25 = vmul.f32 0.25, %v740_v24  ;;  %v990_v26 = vpop.f32.mrb[7].mxu1 }
 0x1cc   : > { %994 = vmatmul.mubr.msk.f32.vlgmr.msra.gmra.mrb[6].mxu0 %vm281_vm2, %v744_v25 }
 0x297   : > { %v507_v27 = vpop.f32.mrb[2].mxu0 }
 0x298   : > { %822 = vrot.lane.b32.xlu1 %v507_v27, %s1025_s27  ;;  %v975_v28 = vpop.f32.mrb[3].mxu0 }
 0x29b   : > { %v662_v29 = vpop.f32.mrb[4].mxu0 }
 0x29c   : > { %826 = vrot.lane.b32.xlu0 %v662_v29, %s1026_s28  ;;  %v985_v30 = vpop.f32.mrb[5].mxu0 }
 0x29f   : > { %v817_v31 = vpop.f32.mrb[6].mxu0 }
 0x2a0   : > { %830 = vrot.lane.b32.xlu1 %v817_v31, %s1027_s29  ;;  %v995_v32 = vpop.f32.mrb[7].mxu0 }
 0x30a   : > { %v823_v33 = vpop.permute.xlu1 %822 }
 0x30b   : > { %v833_v35 = vsel %vm203_vm1, %v351_v14, %v823_v33 }
 0x30e   : > { %v827_v34 = vpop.permute.xlu0 %826 }
 0x30f   : > { %v835_v36 = vsel %vm834_vm3, %v833_v35, %v827_v34 }
 0x312   : > { %v831_v37 = vpop.permute.xlu1 %830 }
 0x313   : > { %v837_v38 = vsel %vm836_vm4, %v835_v36, %v831_v37 }
 0x314   : > { %839 = vst.msk [vmem:[%s199_s5] sm:$0xff] %vm838_vm5, %v837_v38 }
 0x315 PF: > { %s13_s12 = sadd.s32 1, %s1018_s12  }
 0x316   : > { %p10_p4 = scmp.ge.s32.totalorder %s13_s12, 4  }
 0x318   :  { %12 = sbr.rel (!%p10_p4) target bundleno = 1 (0x1), region = 68 }

// kernel: decoder_block.12
= control target key start
LH: loop header
LB: loop body
LE: loop exit
PB: predicated region body
PF: predicated region fallthrough
CT: control target
= control target key end

     0   :  { %vm31_vm0 = vcmask 523264   ;;  %s228_s1 = inlined_call_operand.vmem [shape: f32[64,128], index: 1, kind: input, shape index: {}]   ;;  %s229_s0 = inlined_call_operand.vmem [shape: f32[16,64], index: 0, kind: input, shape index: {}]   ;;  %s230_s2 = inlined_call_operand.vmem [shape: f32[1,128], index: 2, kind: input, shape index: {}]   ;;  %s231_s3 = inlined_call_operand.vmem [shape: f32[16,128], index: 3, kind: output, shape index: {}]  }
   0x1   :  { %v16_v0 = vld [vmem:[%s228_s1] sm:$0xff]  ;;  %v17_v1 = vld [vmem:[%s228_s1 + $0x8] sm:$0xff]  ;;  %v18_v2 = vld [vmem:[%s228_s1 + $0x10] sm:$0xff] }
   0x2   :  { %v151_v3 = vpack.c.bf16 %v17_v1, %v16_v0  ;;  %v19_v4 = vld [vmem:[%s228_s1 + $0x18] sm:$0xff]  ;;  %v20_v6 = vld [vmem:[%s228_s1 + $0x20] sm:$0xff]  ;;  %v21_v7 = vld [vmem:[%s228_s1 + $0x28] sm:$0xff] }
   0x3   :  { %v155_v5 = vpack.c.bf16 %v19_v4, %v18_v2  ;;  %v14_v8 = vld [vmem:[%s229_s0] sm:$0xff]  ;;  %v159_v9 = vpack.c.bf16 %v21_v7, %v20_v6  ;;  %v22_v10 = vld [vmem:[%s228_s1 + $0x30] sm:$0xff]  ;;  %v23_v11 = vld [vmem:[%s228_s1 + $0x38] sm:$0xff] }
   0x4   :  { %152 = vmatprep.subr.bf16.mxu0 %v151_v3  ;;  %148 = vmatprep.mubr.msk.f32.mxu0 %vm31_vm0, %v14_v8  ;;  %v163_v12 = vpack.c.bf16 %v23_v11, %v22_v10  ;;  %v15_v13 = vld [vmem:[%s229_s0 + $0x8] sm:$0xff]  ;;  %v119_v14 = vld [vmem:[%s230_s2] ss:$0 sm:$0xff] }
   0x5   :  { %154 = vmatpush3.bf16.msra.mxu0 %v151_v3 }
   0x6   :  { %156 = vmatprep.subr.bf16.mxu0 %v155_v5 }
   0x9   :  { %158 = vmatpush3.bf16.msra.mxu0 %v155_v5 }
   0xa   :  { %160 = vmatprep.subr.bf16.mxu0 %v159_v9 }
   0xd   :  { %162 = vmatpush3.bf16.msra.mxu0 %v159_v9 }
   0xe   :  { %164 = vmatprep.subr.bf16.mxu0 %v163_v12 }
  0x11   :  { %166 = vmatpush3.bf16.msra.mxu0 %v163_v12 }
  0x14   :  { %149 = vmatmul.mubr.msk.f32.vlgmr.msra.gmra.mrb[0].mxu0 %vm31_vm0, %v15_v13 }
  0xe7   :  { %v150_v15 = vpop.f32.mrb[0].mxu0 }
  0xe8   :  { %v110_v16 = vadd.f32 %v150_v15, %v119_v14  ;;  %v104_v17 = vpop.f32.mrb[1].mxu0 }
  0xe9   :  { %v105_v18 = vadd.f32 %v119_v14, %v104_v17 }
  0xea   :  { %114 = vst [vmem:[%s231_s3 + $0x8] sm:$0xff] %v110_v16 }
  0xeb   :  { %113 = vst [vmem:[%s231_s3] sm:$0xff] %v105_v18 }

// kernel: decoder_block.15
= control target key start
LH: loop header
LB: loop body
LE: loop exit
PB: predicated region body
PF: predicated region fallthrough
CT: control target
= control target key end

     0   :  { %12 = vsyncpa [#allocation4], 0  ;;  %s664_s0 = inlined_call_operand.vmem [shape: f32[16,64], index: 0, kind: input, shape index: {}, may-alias: {0,6}]   ;;  %s665_s1 = inlined_call_operand.vmem [shape: f32[64,128], index: 1, kind: input, shape index: {}]   ;;  %s666_s2 = inlined_call_operand.vmem [shape: f32[1,128], index: 2, kind: input, shape index: {}]   ;;  %s667_s3 = inlined_call_operand.vmem [shape: f32[128,64], index: 3, kind: input, shape index: {}]   ;;  %s668_s4 = inlined_call_operand.vmem [shape: f32[1,64], index: 4, kind: input, shape index: {}]   ;;  %s669_s5 = inlined_call_operand.vmem [shape: f32[2], index: 5, kind: input, shape index: {}]   ;;  %s670_s6 = inlined_call_operand.vmem [shape: f32[16,64], index: 6, kind: input, shape index: {}, may-alias: {0,6}]   ;;  %s671_s7 = inlined_call_operand.hbm [shape: f32[16,64], index: 7, kind: output, shape index: {}]  }
   0x1   :  { %13 = vsyncpa [#allocation3], 0  ;;  %s30_s26 = sshll.u32 %s669_s5, 4  ;;  %s31_s26 = int_to_ptr.vmem [resolvable:$true] %s30_s26 }
   0x2   :  { %s459_s27 = scalar_lea.vmem %s31_s26, 16  ;;  %p464_p1 = scmp.lt.s32.totalorder %s31_s26, %s31_s26 }
   0x3   :  { %p460_p0 = scmp.ne.s32.totalorder %s31_s26, %s459_s27  ;;  %p465_p2 = scmp.lt.s32.totalorder %s459_s27, %s459_s27 }
   0x5   :  { %p466_p3 = por %p465_p2, %p464_p1 }
   0x7   :  { %p467_p4 = pnand %p466_p3, %p460_p0 }
   0x9   :  { %470 = shalt.err (!%p467_p4)
}
   0xa   :  { %s497_s28 = smov [#allocation2]  }
   0xb   :  { %33 = dma.vmem_to_smem %s31_s26, 16, %s497_s28, [#allocation4]  }
   0xc   :  { %493 = dma.done.wait [#allocation4], 16  }
   0xd   :  { %494 = vsyncadd [#allocation4], 4294967280 }
   0xe   :  { %39 = sfence }
   0xf   :  { %v40_v0 = vld [vmem:[%s664_s0] sm:$0xff]  ;;  %vm42_vm0 = vcmask 523264   ;;  %v41_v1 = vld [vmem:[%s664_s0 + $0x8] sm:$0xff]  ;;  %v95_v16 = vld [vmem:[%s665_s1 + $0x10] sm:$0xff]  ;;  %s79_s26 = sld [smem:[#allocation2]]  ;;  %s312_s27 = sld [smem:[#allocation2 + $0x1]] }
  0x10   :  { %v43_v2 = vsel %vm42_vm0, %v40_v0, 0.0  ;;  %v46_v3 = vsel %vm42_vm0, %v41_v1, 0.0  ;;  %v93_v14 = vld [vmem:[%s665_s1] sm:$0xff]  ;;  %v94_v15 = vld [vmem:[%s665_s1 + $0x8] sm:$0xff]  ;;  %v96_v18 = vld [vmem:[%s665_s1 + $0x18] sm:$0xff]  ;;  %s498_s11 = smov [#allocation5]  }
  0x11   :  { %44 = vadd.xlane.f32.xlu0 %v43_v2  ;;  %v399_v17 = vpack.c.bf16 %v94_v15, %v93_v14  ;;  %v403_v19 = vpack.c.bf16 %v96_v18, %v95_v16  ;;  %v97_v20 = vld [vmem:[%s665_s1 + $0x20] sm:$0xff]  ;;  %v98_v21 = vld [vmem:[%s665_s1 + $0x28] sm:$0xff]  ;;  %v99_v23 = vld [vmem:[%s665_s1 + $0x30] sm:$0xff]  ;;  %s300_s12 = sshll.u32 %s498_s11, 4  ;;  %s301_s12 = int_to_ptr.vmem [resolvable:$true] %s300_s12 }
  0x12   :  { %v407_v22 = vpack.c.bf16 %v98_v21, %v97_v20  ;;  %v100_v24 = vld [vmem:[%s665_s1 + $0x38] sm:$0xff]  ;;  %v191_v26 = vld [vmem:[%s667_s3] sm:$0xff]  ;;  %v192_v27 = vld [vmem:[%s667_s3 + $0x8] sm:$0xff]  ;;  %p476_p6 = scmp.lt.s32.totalorder %s301_s12, %s301_s12 }
  0x13   :  { %400 = vmatprep.subr.bf16.mxu0 %v399_v17  ;;  %v411_v25 = vpack.c.bf16 %v100_v24, %v99_v23  ;;  %v193_v28 = vld [vmem:[%s667_s3 + $0x10] sm:$0xff]  ;;  %v415_v29 = vpack.c.bf16 %v192_v27, %v191_v26  ;;  %v194_v30 = vld [vmem:[%s667_s3 + $0x18] sm:$0xff]  ;;  %v195_v32 = vld [vmem:[%s667_s3 + $0x20] sm:$0xff] }
  0x14   :  { %402 = vmatpush3.bf16.msra.mxu0 %v399_v17  ;;  %v419_v31 = vpack.c.bf16 %v194_v30, %v193_v28  ;;  %v196_v33 = vld [vmem:[%s667_s3 + $0x28] sm:$0xff]  ;;  %v197_v35 = vld [vmem:[%s667_s3 + $0x30] sm:$0xff]  ;;  %v198_v36 = vld [vmem:[%s667_s3 + $0x38] sm:$0xff] }
  0x15   :  { %47 = vadd.xlane.f32.xlu0 %v46_v3  ;;  %404 = vmatprep.subr.bf16.mxu0 %v403_v19  ;;  %v423_v34 = vpack.c.bf16 %v196_v33, %v195_v32  ;;  %v427_v37 = vpack.c.bf16 %v198_v36, %v197_v35  ;;  %v199_v38 = vld [vmem:[%s667_s3 + $0x40] sm:$0xff]  ;;  %v200_v39 = vld [vmem:[%s667_s3 + $0x48] sm:$0xff]  ;;  %v201_v41 = vld [vmem:[%s667_s3 + $0x50] sm:$0xff]  ;;  %v80_v63 = vstv %s79_s26 }
  0x16   :  { %416 = vmatprep.subr.bf16.mxu1 %v415_v29  ;;  %v431_v40 = vpack.c.bf16 %v200_v39, %v199_v38  ;;  %v202_v42 = vld [vmem:[%s667_s3 + $0x58] sm:$0xff]  ;;  %v203_v44 = vld [vmem:[%s667_s3 + $0x60] sm:$0xff]  ;;  %v204_v45 = vld [vmem:[%s667_s3 + $0x68] sm:$0xff]  ;;  %v90_v2 = vstv %s312_s27 }
  0x17   :  { %418 = vmatpush3.bf16.msra.mxu1 %v415_v29  ;;  %v435_v43 = vpack.c.bf16 %v202_v42, %v201_v41  ;;  %v439_v46 = vpack.c.bf16 %v204_v45, %v203_v44  ;;  %v290_v21 = vld [vmem:[%s670_s6 + $0x8] sm:$0xff]  ;;  %v289_v24 = vld [vmem:[%s670_s6] sm:$0xff] }
  0x18   :  { %406 = vmatpush3.bf16.msra.mxu0 %v403_v19  ;;  %420 = vmatprep.subr.bf16.mxu1 %v419_v31  ;;  %v316_v19 = vld [vmem:[%s668_s4] ss:$0 sm:$0xff]  ;;  %s471_s4 = scalar_lea.vmem %s301_s12, 256 }
  0x19   :  { %408 = vmatprep.subr.bf16.mxu0 %v407_v22  ;;  %p472_p5 = scmp.ne.s32.totalorder %s301_s12, %s471_s4  ;;  %p477_p7 = scmp.lt.s32.totalorder %s471_s4, %s471_s4 }
  0x1b   :  { %422 = vmatpush3.bf16.msra.mxu1 %v419_v31  ;;  %p478_p8 = por %p477_p7, %p476_p6 }
  0x1c   :  { %410 = vmatpush3.bf16.msra.mxu0 %v407_v22  ;;  %424 = vmatprep.subr.bf16.mxu1 %v423_v34 }
  0x1d   :  { %412 = vmatprep.subr.bf16.mxu0 %v411_v25  ;;  %p479_p9 = pnand %p478_p8, %p472_p5 }
  0x1f   :  { %426 = vmatpush3.bf16.msra.mxu1 %v423_v34 }
  0x20   :  { %414 = vmatpush3.bf16.msra.mxu0 %v411_v25  ;;  %428 = vmatprep.subr.bf16.mxu1 %v427_v37 }
  0x23   :  { %430 = vmatpush3.bf16.msra.mxu1 %v427_v37 }
  0x24   :  { %432 = vmatprep.subr.bf16.mxu1 %v431_v40 }
  0x27   :  { %434 = vmatpush3.bf16.msra.mxu1 %v431_v40 }
  0x28   :  { %436 = vmatprep.subr.bf16.mxu1 %v435_v43 }
  0x2b   :  { %438 = vmatpush3.bf16.msra.mxu1 %v435_v43 }
  0x2c   :  { %440 = vmatprep.subr.bf16.mxu1 %v439_v46 }
  0x2f   :  { %442 = vmatpush3.bf16.msra.mxu1 %v439_v46 }
  0x9e   :  { %v45_v4 = vpop.xlane.xlu0 %44 }
  0x9f   :  { %v50_v5 = vmul.f32 0.015625, %v45_v4 }
  0xa1   :  { %v552_v6 = vsub.f32 %v40_v0, %v50_v5 }
  0xa2   :  { %v48_v7 = vpop.xlane.xlu0 %47 }
  0xa3   :  { %v51_v8 = vmul.f32 0.015625, %v48_v7  ;;  %v54_v9 = vmul.f32 %v552_v6, %v552_v6  ;;  %v81_v0 = vmul.f32 %v80_v63, %v552_v6  ;;  %v206_v6 = vld [vmem:[%s667_s3 + $0x78] sm:$0xff] }
  0xa5   :  { %v556_v10 = vsub.f32 %v41_v1, %v51_v8  ;;  %v56_v11 = vsel %vm42_vm0, %v54_v9, 0.0 }
  0xa6   :  { %57 = vadd.xlane.f32.xlu1 %v56_v11  ;;  %v205_v11 = vld [vmem:[%s667_s3 + $0x70] sm:$0xff] }
  0xa7   :  { %v55_v12 = vmul.f32 %v556_v10, %v556_v10  ;;  %v82_v4 = vmul.f32 %v80_v63, %v556_v10  ;;  %v313_v10 = vld [vmem:[%s666_s2] ss:$0 sm:$0xff] }
  0xa9   :  { %v59_v13 = vsel %vm42_vm0, %v55_v12, 0.0  ;;  %v443_v12 = vpack.c.bf16 %v206_v6, %v205_v11 }
  0xaa   :  { %60 = vadd.xlane.f32.xlu1 %v59_v13 }
  0xab   :  { %444 = vmatprep.subr.bf16.mxu1 %v443_v12 }
  0xac   :  { %446 = vmatpush3.bf16.msra.mxu1 %v443_v12 }
 0x133   :  { %v58_v47 = vpop.xlane.xlu1 %57 }
 0x134   :  { %v63_v48 = vmul.f32 0.015873017, %v58_v47 }
 0x136   :  { %451 = vrsqrt.f32 %v63_v48  ;;  %vm67_vm1 = vcmp.eq.f32.partialorder %v63_v48, inf  ;;  %v70_v53 = vand.u32 2147483648, %v63_v48  ;;  %vm69_vm2 = vcmp.eq.f32.partialorder %v63_v48, 0.0 }
 0x137   :  { %v61_v49 = vpop.xlane.xlu1 %60 }
 0x138   :  { %v64_v50 = vmul.f32 0.015873017, %v61_v49 }
 0x13a   :  { %453 = vrsqrt.f32 %v64_v50  ;;  %vm74_vm3 = vcmp.eq.f32.partialorder %v64_v50, inf  ;;  %v77_v59 = vand.u32 2147483648, %v64_v50  ;;  %vm76_vm4 = vcmp.eq.f32.partialorder %v64_v50, 0.0 }
 0x140   :  { %v452_v51 = vpop.eup %451 }
 0x141   :  { %v66_v52 = vmul.f32 %v452_v51, %v63_v48 }
 0x143   :  { %v68_v54 = vsel %vm67_vm1, %v63_v48, %v66_v52 }
 0x144   :  { %v454_v55 = vpop.eup %453  ;;  %v71_v56 = vsel %vm69_vm2, %v70_v53, %v68_v54 }
 0x145   :  { %v73_v57 = vmul.f32 %v454_v55, %v64_v50  ;;  %v83_v58 = vadd.f32 1e-06, %v71_v56 }
 0x147   :  { %v75_v60 = vsel %vm74_vm3, %v64_v50, %v73_v57  ;;  %455 = vrcp.f32 %v83_v58 }
 0x148   :  { %v78_v61 = vsel %vm76_vm4, %v77_v59, %v75_v60 }
 0x149   :  { %v84_v62 = vadd.f32 1e-06, %v78_v61 }
 0x14b   :  { %457 = vrcp.f32 %v84_v62 }
 0x151   :  { %v456_v1 = vpop.eup %455 }
 0x152   :  { %v86_v3 = vmul.f32 %v456_v1, %v81_v0 }
 0x154   :  { %v91_v5 = vadd.f32 %v90_v2, %v86_v3 }
 0x155   :  { %v458_v7 = vpop.eup %457 }
 0x156   :  { %v88_v8 = vmul.f32 %v458_v7, %v82_v4  ;;  %361 = vmatprep.mubr.msk.f32.mxu0 %vm42_vm0, %v91_v5 }
 0x158   :  { %v92_v9 = vadd.f32 %v90_v2, %v88_v8 }
 0x15a   :  { %362 = vmatmul.mubr.msk.f32.vlgmr.msra.gmra.mrb[0].mxu0 %vm42_vm0, %v92_v9 }
 0x22d   :  { %v363_v13 = vpop.f32.mrb[0].mxu0 }
 0x22e   :  { %v186_v14 = vadd.f32 %v363_v13, %v313_v10  ;;  %v180_v15 = vpop.f32.mrb[1].mxu0 }
 0x22f   :  { %v181_v16 = vadd.f32 %v313_v10, %v180_v15 }
 0x230   :  { %v190_v18 = vmax.f32 %v186_v14, 0.0 }
 0x231   :  { %v189_v17 = vmax.f32 %v181_v16, 0.0 }
 0x233   :  { %396 = vmatprep.mubr.f32.mxu1 %v189_v17 }
 0x234   :  { %397 = vmatmul.mubr.f32.vlgmr.msra.gmra.mrb[0].mxu1 %v190_v18 }
 0x307   :  { %v398_v20 = vpop.f32.mrb[0].mxu1 }
 0x308   :  { %v286_v22 = vadd.f32 %v398_v20, %v316_v19  ;;  %v280_v23 = vpop.f32.mrb[1].mxu1 }
 0x309   :  { %v281_v25 = vadd.f32 %v316_v19, %v280_v23 }
 0x30a   :  { %v292_v26 = vadd.f32 %v290_v21, %v286_v22 }
 0x30b   :  { %v291_v27 = vadd.f32 %v289_v24, %v281_v25 }
 0x30c   :  { %294 = vst.msk [vmem:[#allocation5 + $0x8] sm:$0xff] %vm42_vm0, %v292_v26 }
 0x30d   :  { %293 = vst.msk [vmem:[#allocation5] sm:$0xff] %vm42_vm0, %v291_v27 }
 0x30e   :  { %482 = shalt.err (!%p479_p9)
}
 0x30f   :  { %s483_s16 = scalar_lea.hbm %s671_s7, 256 }
 0x310   :  { %p484_p10 = scmp.ne.s32.totalorder %s671_s7, %s483_s16  ;;  %p487_p11 = scmp.lt.u32.totalorder %s483_s16, %s671_s7 }
 0x312   :  { %p489_p12 = pnand %p487_p11, %p484_p10 }
 0x314   :  { %492 = shalt.err (!%p489_p12)
}
 0x315   :  { %s499_s20 = smov 128   ;;  %s500_s21 = smov 8  }
 0x316   :  { %306 = dma.vmem_to_hbm [thread:$0]  %s301_s12, 256, %s671_s7, [#allocation3], %s499_s20, %s499_s20, %s500_s21  }
 0x317   :  { %495 = dma.done.wait [#allocation3], 256  }
 0x318   :  { %496 = vsyncadd [#allocation3], 4294967040 }
 0x319   :  { %310 = vsyncpa [#allocation3], 1 }
 0x31a   :  { %311 = vsyncpa [#allocation4], 1 }

</bundles_post_ra>
